<compile_context>
chip_gen: v7x
topology: tpu7x:2x2x1
jax: 0.10.0
libtpu: 0.0.40
codegen_flags: <defaults>
</compile_context>

<pallas_src>
import jax
import jax.numpy as jnp
from jax.experimental import pallas as pl
from jax.experimental.pallas import tpu as pltpu

# ----------------------------- geometry ------------------------------------ #
IMG = 16                      # input H = W
C_IN, C1, C2 = 3, 32, 64      # channels: input, conv1, conv2
PH = (IMG - 4) // 2           # 6: pooled spatial size (two VALID 3x3 convs + pool 2)
R = IMG * IMG                 # 256 flattened spatial positions
TAP_MAX = 2 * IMG + 2         # 34: largest flat row offset of a 3x3 tap
M2 = R + 2 * IMG              # 288: conv2 kh-shifted row extent
M1 = 296                      # conv1 rows computed (>= M2 + 2, multiple of 8)
X_ROWS = 336                  # zero-padded flat-input rows (>= M1 + TAP_MAX)
K1 = 9 * C_IN                 # 27 im2col columns for conv1
K1P = 32                      # conv1 im2col columns padded to 32 lanes
FLAT = PH * PH * C2           # 2304 flattened features
FOLD_ROWS = PH * PH // 2      # 18: pooled output folded into (18, 128) lane-dense rows
HID, OUT = 128, 9
OUT_PAD = 128                 # fc2 padded to a lane-dense 128-wide output
MLP_TB = 16                   # MLP batch rows per grid step (bf16 sublane-aligned)

# Geometry invariants the kernels silently rely on (conv2 tap slicing / im2col).
assert M2 >= R + 2 * IMG            # conv2 kh-shifts (0, 16, 32) stay inside h1e
assert M1 >= M2 + 2                 # kw-shifted h1 slices (offsets 0, 1, 2) stay inside h1
assert X_ROWS >= M1 + TAP_MAX       # every im2col tap stays inside the padded x slab
assert M1 % 8 == 0 and M2 % 16 == 0 and IMG % 16 == 0 and FLAT % 128 == 0


# ------------------- fused conv1 -> conv2 -> maxpool kernel ----------------- #

def _conv_pool_kernel(p_ref, w1_ref, b1_ref, w2_ref, b2_ref, o_ref, h1e_ref):
    """conv1+relu -> conv2+relu -> 2x2 maxpool for ONE image (grid over batch).

    p_ref holds pre-built im2col patches of the zero-padded flat input, so
    conv1 is a single K=32 bf16 MXU matmul.  conv2's three kw-taps are packed
    along lanes into the (288, 96) bf16 scratch, so conv2 is three K=96
    matmuls whose row offsets (0, 16, 32) are sublane-aligned.  Accumulation is
    f32; bias/relu/pool run on f32 (v5e-safe).  Rows past the valid conv-output
    range hold finite garbage that is never read by the pool.
    """
    # ---- conv1: one im2col matmul (K=32), bias + relu in f32 ----
    h1 = jnp.dot(p_ref[0], w1_ref[...], preferred_element_type=jnp.float32)   # (296, 32)
    h1 = jnp.maximum(h1 + b1_ref[...], 0.0)

    # ---- pack the 3 kw-taps of h1 along lanes: h1e[j, kw*32 + c] = h1[j + kw, c]
    h1e_ref[:, 0:C1]          = h1[0:M2].astype(jnp.bfloat16)
    h1e_ref[:, C1:2 * C1]     = h1[1:1 + M2].astype(jnp.bfloat16)
    h1e_ref[:, 2 * C1:3 * C1] = h1[2:2 + M2].astype(jnp.bfloat16)

    # ---- conv2: 3 kh-grouped matmuls (K=96), sublane-aligned row offsets 0/16/32
    acc = jnp.dot(h1e_ref[0:R, :], w2_ref[0], preferred_element_type=jnp.float32)
    acc = acc + jnp.dot(h1e_ref[IMG:IMG + R, :], w2_ref[1],
                        preferred_element_type=jnp.float32)
    acc = acc + jnp.dot(h1e_ref[2 * IMG:2 * IMG + R, :], w2_ref[2],
                        preferred_element_type=jnp.float32)
    y = jnp.maximum(acc + b2_ref[...], 0.0)             # (256, 64); valid rows: i, j <= 11

    # ---- 2x2 max pool (stride 2), f32 ----
    y4 = y.reshape(IMG // 2, 2, IMG, C2)                 # leading-dim split only
    rmax = jnp.maximum(y4[:, 0], y4[:, 1])[:PH]          # (6, 16, 64): spatial rows 0..11
    cols = [jnp.maximum(rmax[:, 2 * c, :], rmax[:, 2 * c + 1, :]) for c in range(PH)]
    # TODO(synk): the reshape-to-(6,8,2,64)+max pool variant would save a few
    # relayouts but risks an unsupported minor-dim shape_cast; keeping the
    # proven slice+maximum+stack form.

    # ---- fold (6,6,64) -> (18,128): even pooled columns in lanes 0..63, odd in
    #      lanes 64..127, so the HBM buffer row-major flattens to the same HWC
    #      order fc1's (offline-permuted) weight expects.
    h_even = jnp.stack(cols[0::2], axis=1).reshape(FOLD_ROWS, C2)   # (18, 64)
    h_odd = jnp.stack(cols[1::2], axis=1).reshape(FOLD_ROWS, C2)    # (18, 64)
    o_ref[0, :, 0:C2] = h_even.astype(o_ref.dtype)
    o_ref[0, :, C2:2 * C2] = h_odd.astype(o_ref.dtype)


def conv_pool(patches, w1, b1, w2, b2):
    n = patches.shape[0]
    return pl.pallas_call(
        _conv_pool_kernel,
        out_shape=jax.ShapeDtypeStruct((n, FOLD_ROWS, 2 * C2), jnp.bfloat16),
        grid=(n,),
        in_specs=[
            pl.BlockSpec((1, M1, K1P), lambda i: (i, 0, 0)),
            pl.BlockSpec((K1P, C1), lambda i: (0, 0)),
            pl.BlockSpec((1, C1), lambda i: (0, 0)),
            pl.BlockSpec((3, 3 * C1, C2), lambda i: (0, 0, 0)),
            pl.BlockSpec((1, C2), lambda i: (0, 0)),
        ],
        out_specs=pl.BlockSpec((1, FOLD_ROWS, 2 * C2), lambda i: (i, 0, 0)),
        scratch_shapes=[pltpu.VMEM((M2, 3 * C1), jnp.bfloat16)],
        compiler_params=pltpu.CompilerParams(
            dimension_semantics=("parallel",)),          # batch shards across v7x's 2 TCs
    )(patches, w1, b1, w2, b2)


# -------------------------- fc1 + relu + fc2 kernel ------------------------- #

def _mlp_kernel(x_ref, w1_ref, b1_ref, w2_ref, b2_ref, o_ref):
    # fc1 + bias + relu and fc2 (zero-padded to 128 lanes) + bias, both bf16 on
    # the MXU with f32 accumulation.  dropout2 is an inference-mode identity.
    h = jnp.dot(x_ref[...], w1_ref[...], preferred_element_type=jnp.float32)
    h = jnp.maximum(h + b1_ref[...], 0.0)
    out = jnp.dot(h.astype(jnp.bfloat16), w2_ref[...],
                  preferred_element_type=jnp.float32) + b2_ref[...]
    o_ref[...] = out.astype(o_ref.dtype)


def mlp(flat, w1, b1, w2, b2):
    n = flat.shape[0]
    steps = max(2, pl.cdiv(n, MLP_TB))       # >= 2 grid steps so v7x's 2nd TC gets work
    n_pad = steps * MLP_TB
    if n_pad != n:                            # zero rows; their outputs are sliced away
        flat = jnp.pad(flat, ((0, n_pad - n), (0, 0)))
    out = pl.pallas_call(
        _mlp_kernel,
        out_shape=jax.ShapeDtypeStruct((n_pad, OUT_PAD), jnp.float32),
        grid=(steps,),
        in_specs=[
            pl.BlockSpec((MLP_TB, FLAT), lambda i: (i, 0)),
            pl.BlockSpec((FLAT, HID), lambda i: (0, 0)),
            pl.BlockSpec((1, HID), lambda i: (0, 0)),
            pl.BlockSpec((HID, OUT_PAD), lambda i: (0, 0)),
            pl.BlockSpec((1, OUT_PAD), lambda i: (0, 0)),
        ],
        out_specs=pl.BlockSpec((MLP_TB, OUT_PAD), lambda i: (i, 0)),
        compiler_params=pltpu.CompilerParams(
            dimension_semantics=("parallel",)),
    )(flat, w1, b1, w2, b2)
    return out[:n]


# ------------------------------- Net forward -------------------------------- #

def prepare_params(params):
    """One-time offline layout transforms (permutations / zero-pad / bf16 cast)."""
    # conv1 im2col weight: (3,3,3,32) HWIO -> (27, 32), zero-pad rows to 32.
    w1 = params["w_conv1"].reshape(K1, C1)
    w1 = jnp.zeros((K1P, C1), jnp.float32).at[:K1].set(w1).astype(jnp.bfloat16)
    # conv2 kh-grouped weight: (3,3,32,64) -> (3, 96, 64), rows = kw*32 + cin.
    w2 = params["w_conv2"].reshape(3, 3 * C1, C2).astype(jnp.bfloat16)
    # Fold torch.flatten's CHW ordering into fc1's rows so the kernel-side
    # flatten uses the natural row-major HWC order (no runtime transpose).
    wf1 = (params["w_fc1"].reshape(C2, PH, PH, HID)
           .transpose(1, 2, 0, 3).reshape(FLAT, HID).astype(jnp.bfloat16))
    # Pad fc2 to 128 output lanes for a lane-dense store.
    wf2 = (jnp.zeros((HID, OUT_PAD), jnp.float32).at[:, :OUT].set(params["w_fc2"])
           .astype(jnp.bfloat16))
    bf2 = jnp.zeros((1, OUT_PAD), jnp.float32).at[:, :OUT].set(params["b_fc2"])
    return {"w1": w1, "b1": params["b_conv1"], "w2": w2, "b2": params["b_conv2"],
            "wf1": wf1, "bf1": params["b_fc1"], "wf2": wf2, "bf2": bf2}


def net_forward(x_nchw, prep):
    n = x_nchw.shape[0]
    # NCHW -> NHWC -> flat row-major spatial, plus zero rows so tap slices are in-bounds.
    x = jnp.transpose(x_nchw, (0, 2, 3, 1)).reshape(n, R, C_IN)
    x = jnp.pad(x, ((0, 0), (0, X_ROWS - R), (0, 0)))
    # im2col for conv1: patch column (kh*3 + kw)*3 + c  <->  x[row + kh*16 + kw, c].
    patches = jnp.concatenate(
        [x[:, kh * IMG + kw: kh * IMG + kw + M1, :]
         for kh in range(3) for kw in range(3)], axis=-1)              # (n, 296, 27)
    patches = jnp.pad(patches, ((0, 0), (0, 0), (0, K1P - K1))).astype(jnp.bfloat16)

    pooled = conv_pool(patches, prep["w1"], prep["b1"],
                       prep["w2"], prep["b2"])                          # (n, 18, 128) bf16
    # dropout1: inference identity.  (n,18,128)->(n,2304) is a free row-major
    # reshape; the CHW permutation torch.flatten implies is folded into prep["wf1"].
    flat = pooled.reshape(n, FLAT)
    out = mlp(flat, prep["wf1"], prep["bf1"], prep["wf2"], prep["bf2"])  # (n, 128) f32
    return out[:, :OUT]                                                  # (n, 9)


def init_params(key):
    ks = jax.random.split(key, 8)
    s = 0.05
    return {
        "w_conv1": s * jax.random.normal(ks[0], (3, 3, C_IN, C1), jnp.float32),  # HWIO
        "b_conv1": s * jax.random.normal(ks[1], (1, C1), jnp.float32),
        "w_conv2": s * jax.random.normal(ks[2], (3, 3, C1, C2), jnp.float32),    # HWIO
        "b_conv2": s * jax.random.normal(ks[3], (1, C2), jnp.float32),
        # fc1 rows in torch.flatten's (C, H, W) order, like the PyTorch module.
        "w_fc1": s * jax.random.normal(ks[4], (FLAT, HID), jnp.float32),
        "b_fc1": s * jax.random.normal(ks[5], (1, HID), jnp.float32),
        "w_fc2": s * jax.random.normal(ks[6], (HID, OUT), jnp.float32),
        "b_fc2": s * jax.random.normal(ks[7], (1, OUT), jnp.float32),
    }


def net_reference(x_nchw, params):
    """Pure-JAX/XLA f32 reference of the same forward pass (dropout = identity)."""
    hp = jax.lax.Precision.HIGHEST
    x = jnp.transpose(x_nchw, (0, 2, 3, 1))
    y = jax.lax.conv_general_dilated(
        x, params["w_conv1"], (1, 1), "VALID",
        dimension_numbers=("NHWC", "HWIO", "NHWC"), precision=hp)
    y = jnp.maximum(y + params["b_conv1"][0], 0.0)
    y = jax.lax.conv_general_dilated(
        y, params["w_conv2"], (1, 1), "VALID",
        dimension_numbers=("NHWC", "HWIO", "NHWC"), precision=hp)
    y = jnp.maximum(y + params["b_conv2"][0], 0.0)
    y = jax.lax.reduce_window(y, -jnp.inf, jax.lax.max,
                              (1, 2, 2, 1), (1, 2, 2, 1), "VALID")
    n = y.shape[0]
    flat = jnp.transpose(y, (0, 3, 1, 2)).reshape(n, -1)   # torch.flatten(x, 1) on NCHW
    h = jnp.maximum(jnp.dot(flat, params["w_fc1"], precision=hp) + params["b_fc1"], 0.0)
    return jnp.dot(h, params["w_fc2"], precision=hp) + params["b_fc2"]


if __name__ == "__main__":
    key = jax.random.PRNGKey(0)
    k_x, k_p = jax.random.split(key)
    x = jax.random.normal(k_x, (2, C_IN, IMG, IMG), jnp.float32)   # NCHW, like PyTorch
    params = init_params(k_p)
    prep = jax.tree_util.tree_map(jax.block_until_ready, prepare_params(params))

    fwd = jax.jit(net_forward)
    out = jax.block_until_ready(fwd(x, prep))
    assert out.shape == (2, OUT) and out.dtype == jnp.float32

    # Numerical check against the f32/HIGHEST XLA reference.  Kernels deliberately
    # use bf16 MXU operands (f32 accumulate), so the tolerance admits bf16 rounding.
    ref = jax.block_until_ready(net_reference(x, params))
    max_err = float(jnp.max(jnp.abs(out - ref)))
    assert jnp.allclose(out, ref, rtol=5e-2, atol=2e-2), f"max |diff| = {max_err}"

    # TODO(synk): dropout1/dropout2 are inference-mode identities (no RNG mask);
    # fc1 is sized for the 16x16 test input (2304 features) instead of the
    # original 614656-wide layer that corresponds to 200x200 images.
    print("KERNEL_OK")
</pallas_src>

<mosaic_0001>
module attributes {stable_mosaic.version = 11 : i64} {
  func.func @_conv_pool_kernel(%arg0: i32, %arg1: memref<1x296x32xbf16, #tpu.memory_space<vmem>>, %arg2: memref<32x32xbf16, #tpu.memory_space<vmem>>, %arg3: memref<1x32xf32, #tpu.memory_space<vmem>>, %arg4: memref<3x96x64xbf16, #tpu.memory_space<vmem>>, %arg5: memref<1x64xf32, #tpu.memory_space<vmem>>, %arg6: memref<1x18x128xbf16, #tpu.memory_space<vmem>>, %arg7: memref<288x96xbf16, #tpu.memory_space<vmem>>) attributes {dimension_semantics = [#tpu.dimension_semantics<parallel>], iteration_bounds = array<i64: 2>, scalar_prefetch = 0 : i64, scratch_operands = 1 : i64, tpu.core_type = #tpu.core_type<tc>, window_params = [{transform_indices = @transform_0, window_bounds = array<i64: 1, 296, 32>}, {pipeline_mode = #tpu.pipeline_mode<synchronous>, transform_indices = @transform_1, window_bounds = array<i64: 32, 32>}, {pipeline_mode = #tpu.pipeline_mode<synchronous>, transform_indices = @transform_2, window_bounds = array<i64: 1, 32>}, {pipeline_mode = #tpu.pipeline_mode<synchronous>, transform_indices = @transform_3, window_bounds = array<i64: 3, 96, 64>}, {pipeline_mode = #tpu.pipeline_mode<synchronous>, transform_indices = @transform_4, window_bounds = array<i64: 1, 64>}, {transform_indices = @transform_5, window_bounds = array<i64: 1, 18, 128>}]} {
    %c0 = arith.constant 0 : index
    %c0_0 = arith.constant 0 : index
    %c0_1 = arith.constant 0 : index
    %0 = vector.load %arg1[%c0, %c0_0, %c0_1] : memref<1x296x32xbf16, #tpu.memory_space<vmem>>, vector<1x296x32xbf16>
    %1 = vector.shape_cast %0 : vector<1x296x32xbf16> to vector<296x32xbf16>
    %c0_2 = arith.constant 0 : index
    %c0_3 = arith.constant 0 : index
    %2 = vector.load %arg2[%c0_2, %c0_3] : memref<32x32xbf16, #tpu.memory_space<vmem>>, vector<32x32xbf16>
    %cst = arith.constant dense<0.000000e+00> : vector<296x32xf32>
    %3 = tpu.matmul %1, %2, %cst {dimension_numbers = #tpu.dot_dimension_numbers<[1], [0], [0], [1], [0, 0, 1, 1], [], []>} : vector<296x32xbf16>, vector<32x32xbf16>, vector<296x32xf32> -> vector<296x32xf32>
    %c0_4 = arith.constant 0 : index
    %c0_5 = arith.constant 0 : index
    %4 = vector.load %arg3[%c0_4, %c0_5] : memref<1x32xf32, #tpu.memory_space<vmem>>, vector<1x32xf32>
    %5 = vector.broadcast %4 : vector<1x32xf32> to vector<296x32xf32>
    %6 = arith.addf %3, %5 : vector<296x32xf32>
    %cst_6 = arith.constant 0.000000e+00 : f32
    %7 = vector.broadcast %cst_6 : f32 to vector<296x32xf32>
    %8 = arith.maximumf %6, %7 : vector<296x32xf32>
    %9 = vector.extract_strided_slice %8 {offsets = [0, 0], sizes = [288, 32], strides = [1, 1]} : vector<296x32xf32> to vector<288x32xf32>
    %10 = arith.truncf %9 : vector<288x32xf32> to vector<288x32xbf16>
    %c0_7 = arith.constant 0 : index
    %c0_8 = arith.constant 0 : index
    %11 = vector.load %arg7[%c0_7, %c0_8] : memref<288x96xbf16, #tpu.memory_space<vmem>>, vector<288x32xbf16>
    tpu.vector_store %arg7[%c0_7, %c0_8], %10 {strides = array<i32>} : memref<288x96xbf16, #tpu.memory_space<vmem>>, vector<288x32xbf16>,
    %12 = vector.extract_strided_slice %8 {offsets = [1, 0], sizes = [288, 32], strides = [1, 1]} : vector<296x32xf32> to vector<288x32xf32>
    %13 = arith.truncf %12 : vector<288x32xf32> to vector<288x32xbf16>
    %c0_9 = arith.constant 0 : index
    %c32 = arith.constant 32 : index
    %14 = vector.load %arg7[%c0_9, %c32] : memref<288x96xbf16, #tpu.memory_space<vmem>>, vector<288x32xbf16>
    tpu.vector_store %arg7[%c0_9, %c32], %13 {strides = array<i32>} : memref<288x96xbf16, #tpu.memory_space<vmem>>, vector<288x32xbf16>,
    %15 = vector.extract_strided_slice %8 {offsets = [2, 0], sizes = [288, 32], strides = [1, 1]} : vector<296x32xf32> to vector<288x32xf32>
    %16 = arith.truncf %15 : vector<288x32xf32> to vector<288x32xbf16>
    %c0_10 = arith.constant 0 : index
    %c64 = arith.constant 64 : index
    %17 = vector.load %arg7[%c0_10, %c64] : memref<288x96xbf16, #tpu.memory_space<vmem>>, vector<288x32xbf16>
    tpu.vector_store %arg7[%c0_10, %c64], %16 {strides = array<i32>} : memref<288x96xbf16, #tpu.memory_space<vmem>>, vector<288x32xbf16>,
    %c0_11 = arith.constant 0 : index
    %c0_12 = arith.constant 0 : index
    %18 = vector.load %arg7[%c0_11, %c0_12] : memref<288x96xbf16, #tpu.memory_space<vmem>>, vector<256x96xbf16>
    %c0_13 = arith.constant 0 : index
    %c0_14 = arith.constant 0 : index
    %c0_15 = arith.constant 0 : index
    %19 = vector.load %arg4[%c0_13, %c0_14, %c0_15] : memref<3x96x64xbf16, #tpu.memory_space<vmem>>, vector<1x96x64xbf16>
    %20 = vector.shape_cast %19 : vector<1x96x64xbf16> to vector<96x64xbf16>
    %cst_16 = arith.constant dense<0.000000e+00> : vector<256x64xf32>
    %21 = tpu.matmul %18, %20, %cst_16 {dimension_numbers = #tpu.dot_dimension_numbers<[1], [0], [0], [1], [0, 0, 1, 1], [], []>} : vector<256x96xbf16>, vector<96x64xbf16>, vector<256x64xf32> -> vector<256x64xf32>
    %c16 = arith.constant 16 : index
    %c0_17 = arith.constant 0 : index
    %22 = vector.load %arg7[%c16, %c0_17] : memref<288x96xbf16, #tpu.memory_space<vmem>>, vector<256x96xbf16>
    %c1 = arith.constant 1 : index
    %c0_18 = arith.constant 0 : index
    %c0_19 = arith.constant 0 : index
    %23 = vector.load %arg4[%c1, %c0_18, %c0_19] : memref<3x96x64xbf16, #tpu.memory_space<vmem>>, vector<1x96x64xbf16>
    %24 = vector.shape_cast %23 : vector<1x96x64xbf16> to vector<96x64xbf16>
    %cst_20 = arith.constant dense<0.000000e+00> : vector<256x64xf32>
    %25 = tpu.matmul %22, %24, %cst_20 {dimension_numbers = #tpu.dot_dimension_numbers<[1], [0], [0], [1], [0, 0, 1, 1], [], []>} : vector<256x96xbf16>, vector<96x64xbf16>, vector<256x64xf32> -> vector<256x64xf32>
    %26 = arith.addf %21, %25 : vector<256x64xf32>
    %c32_21 = arith.constant 32 : index
    %c0_22 = arith.constant 0 : index
    %27 = vector.load %arg7[%c32_21, %c0_22] : memref<288x96xbf16, #tpu.memory_space<vmem>>, vector<256x96xbf16>
    %c2 = arith.constant 2 : index
    %c0_23 = arith.constant 0 : index
    %c0_24 = arith.constant 0 : index
    %28 = vector.load %arg4[%c2, %c0_23, %c0_24] : memref<3x96x64xbf16, #tpu.memory_space<vmem>>, vector<1x96x64xbf16>
    %29 = vector.shape_cast %28 : vector<1x96x64xbf16> to vector<96x64xbf16>
    %cst_25 = arith.constant dense<0.000000e+00> : vector<256x64xf32>
    %30 = tpu.matmul %27, %29, %cst_25 {dimension_numbers = #tpu.dot_dimension_numbers<[1], [0], [0], [1], [0, 0, 1, 1], [], []>} : vector<256x96xbf16>, vector<96x64xbf16>, vector<256x64xf32> -> vector<256x64xf32>
    %31 = arith.addf %26, %30 : vector<256x64xf32>
    %c0_26 = arith.constant 0 : index
    %c0_27 = arith.constant 0 : index
    %32 = vector.load %arg5[%c0_26, %c0_27] : memref<1x64xf32, #tpu.memory_space<vmem>>, vector<1x64xf32>
    %33 = vector.broadcast %32 : vector<1x64xf32> to vector<256x64xf32>
    %34 = arith.addf %31, %33 : vector<256x64xf32>
    %cst_28 = arith.constant 0.000000e+00 : f32
    %35 = vector.broadcast %cst_28 : f32 to vector<256x64xf32>
    %36 = arith.maximumf %34, %35 : vector<256x64xf32>
    %37 = vector.shape_cast %36 : vector<256x64xf32> to vector<8x2x16x64xf32>
    %38 = vector.extract_strided_slice %37 {offsets = [0, 0, 0, 0], sizes = [8, 1, 16, 64], strides = [1, 1, 1, 1]} : vector<8x2x16x64xf32> to vector<8x1x16x64xf32>
    %39 = vector.shape_cast %38 : vector<8x1x16x64xf32> to vector<8x16x64xf32>
    %40 = vector.extract_strided_slice %37 {offsets = [0, 1, 0, 0], sizes = [8, 1, 16, 64], strides = [1, 1, 1, 1]} : vector<8x2x16x64xf32> to vector<8x1x16x64xf32>
    %41 = vector.shape_cast %40 : vector<8x1x16x64xf32> to vector<8x16x64xf32>
    %42 = arith.maximumf %39, %41 : vector<8x16x64xf32>
    %43 = vector.extract_strided_slice %42 {offsets = [0, 0, 0], sizes = [6, 16, 64], strides = [1, 1, 1]} : vector<8x16x64xf32> to vector<6x16x64xf32>
    %44 = vector.extract_strided_slice %43 {offsets = [0, 0, 0], sizes = [6, 1, 64], strides = [1, 1, 1]} : vector<6x16x64xf32> to vector<6x1x64xf32>
    %45 = vector.shape_cast %44 : vector<6x1x64xf32> to vector<6x64xf32>
    %46 = vector.extract_strided_slice %43 {offsets = [0, 1, 0], sizes = [6, 1, 64], strides = [1, 1, 1]} : vector<6x16x64xf32> to vector<6x1x64xf32>
    %47 = vector.shape_cast %46 : vector<6x1x64xf32> to vector<6x64xf32>
    %48 = arith.maximumf %45, %47 : vector<6x64xf32>
    %49 = vector.extract_strided_slice %43 {offsets = [0, 2, 0], sizes = [6, 1, 64], strides = [1, 1, 1]} : vector<6x16x64xf32> to vector<6x1x64xf32>
    %50 = vector.shape_cast %49 : vector<6x1x64xf32> to vector<6x64xf32>
    %51 = vector.extract_strided_slice %43 {offsets = [0, 3, 0], sizes = [6, 1, 64], strides = [1, 1, 1]} : vector<6x16x64xf32> to vector<6x1x64xf32>
    %52 = vector.shape_cast %51 : vector<6x1x64xf32> to vector<6x64xf32>
    %53 = arith.maximumf %50, %52 : vector<6x64xf32>
    %54 = vector.extract_strided_slice %43 {offsets = [0, 4, 0], sizes = [6, 1, 64], strides = [1, 1, 1]} : vector<6x16x64xf32> to vector<6x1x64xf32>
    %55 = vector.shape_cast %54 : vector<6x1x64xf32> to vector<6x64xf32>
    %56 = vector.extract_strided_slice %43 {offsets = [0, 5, 0], sizes = [6, 1, 64], strides = [1, 1, 1]} : vector<6x16x64xf32> to vector<6x1x64xf32>
    %57 = vector.shape_cast %56 : vector<6x1x64xf32> to vector<6x64xf32>
    %58 = arith.maximumf %55, %57 : vector<6x64xf32>
    %59 = vector.extract_strided_slice %43 {offsets = [0, 6, 0], sizes = [6, 1, 64], strides = [1, 1, 1]} : vector<6x16x64xf32> to vector<6x1x64xf32>
    %60 = vector.shape_cast %59 : vector<6x1x64xf32> to vector<6x64xf32>
    %61 = vector.extract_strided_slice %43 {offsets = [0, 7, 0], sizes = [6, 1, 64], strides = [1, 1, 1]} : vector<6x16x64xf32> to vector<6x1x64xf32>
    %62 = vector.shape_cast %61 : vector<6x1x64xf32> to vector<6x64xf32>
    %63 = arith.maximumf %60, %62 : vector<6x64xf32>
    %64 = vector.extract_strided_slice %43 {offsets = [0, 8, 0], sizes = [6, 1, 64], strides = [1, 1, 1]} : vector<6x16x64xf32> to vector<6x1x64xf32>
    %65 = vector.shape_cast %64 : vector<6x1x64xf32> to vector<6x64xf32>
    %66 = vector.extract_strided_slice %43 {offsets = [0, 9, 0], sizes = [6, 1, 64], strides = [1, 1, 1]} : vector<6x16x64xf32> to vector<6x1x64xf32>
    %67 = vector.shape_cast %66 : vector<6x1x64xf32> to vector<6x64xf32>
    %68 = arith.maximumf %65, %67 : vector<6x64xf32>
    %69 = vector.extract_strided_slice %43 {offsets = [0, 10, 0], sizes = [6, 1, 64], strides = [1, 1, 1]} : vector<6x16x64xf32> to vector<6x1x64xf32>
    %70 = vector.shape_cast %69 : vector<6x1x64xf32> to vector<6x64xf32>
    %71 = vector.extract_strided_slice %43 {offsets = [0, 11, 0], sizes = [6, 1, 64], strides = [1, 1, 1]} : vector<6x16x64xf32> to vector<6x1x64xf32>
    %72 = vector.shape_cast %71 : vector<6x1x64xf32> to vector<6x64xf32>
    %73 = arith.maximumf %70, %72 : vector<6x64xf32>
    %74 = vector.shape_cast %48 : vector<6x64xf32> to vector<6x1x64xf32>
    %75 = vector.shape_cast %58 : vector<6x64xf32> to vector<6x1x64xf32>
    %76 = vector.shape_cast %68 : vector<6x64xf32> to vector<6x1x64xf32>
    %77 = tpu.concatenate %74, %75, %76 in 1 : vector<6x1x64xf32>, vector<6x1x64xf32>, vector<6x1x64xf32> -> vector<6x3x64xf32>
    %78 = vector.shape_cast %77 : vector<6x3x64xf32> to vector<18x64xf32>
    %79 = vector.shape_cast %53 : vector<6x64xf32> to vector<6x1x64xf32>
    %80 = vector.shape_cast %63 : vector<6x64xf32> to vector<6x1x64xf32>
    %81 = vector.shape_cast %73 : vector<6x64xf32> to vector<6x1x64xf32>
    %82 = tpu.concatenate %79, %80, %81 in 1 : vector<6x1x64xf32>, vector<6x1x64xf32>, vector<6x1x64xf32> -> vector<6x3x64xf32>
    %83 = vector.shape_cast %82 : vector<6x3x64xf32> to vector<18x64xf32>
    %84 = arith.truncf %78 : vector<18x64xf32> to vector<18x64xbf16>
    %c0_29 = arith.constant 0 : index
    %c0_30 = arith.constant 0 : index
    %c0_31 = arith.constant 0 : index
    %85 = vector.load %arg6[%c0_29, %c0_30, %c0_31] : memref<1x18x128xbf16, #tpu.memory_space<vmem>>, vector<1x18x64xbf16>
    %86 = vector.shape_cast %85 : vector<1x18x64xbf16> to vector<18x64xbf16>
    %87 = vector.shape_cast %84 : vector<18x64xbf16> to vector<1x18x64xbf16>
    tpu.vector_store %arg6[%c0_29, %c0_30, %c0_31], %87 {strides = array<i32>} : memref<1x18x128xbf16, #tpu.memory_space<vmem>>, vector<1x18x64xbf16>,
    %88 = arith.truncf %83 : vector<18x64xf32> to vector<18x64xbf16>
    %c0_32 = arith.constant 0 : index
    %c0_33 = arith.constant 0 : index
    %c64_34 = arith.constant 64 : index
    %89 = vector.load %arg6[%c0_32, %c0_33, %c64_34] : memref<1x18x128xbf16, #tpu.memory_space<vmem>>, vector<1x18x64xbf16>
    %90 = vector.shape_cast %89 : vector<1x18x64xbf16> to vector<18x64xbf16>
    %91 = vector.shape_cast %88 : vector<18x64xbf16> to vector<1x18x64xbf16>
    tpu.vector_store %arg6[%c0_32, %c0_33, %c64_34], %91 {strides = array<i32>} : memref<1x18x128xbf16, #tpu.memory_space<vmem>>, vector<1x18x64xbf16>,
    return
  }
  func.func @transform_0(%arg0: i32) -> (i32, i32, i32) {
    %c0_i32 = arith.constant 0 : i32
    %c0_i32_0 = arith.constant 0 : i32
    %c0_i32_1 = arith.constant 0 : i32
    return %arg0, %c0_i32, %c0_i32_0 : i32, i32, i32
  }
  func.func @transform_1(%arg0: i32) -> (i32, i32) {
    %c0_i32 = arith.constant 0 : i32
    %c0_i32_0 = arith.constant 0 : i32
    %c0_i32_1 = arith.constant 0 : i32
    return %c0_i32, %c0_i32_0 : i32, i32
  }
  func.func @transform_2(%arg0: i32) -> (i32, i32) {
    %c0_i32 = arith.constant 0 : i32
    %c0_i32_0 = arith.constant 0 : i32
    %c0_i32_1 = arith.constant 0 : i32
    return %c0_i32, %c0_i32_0 : i32, i32
  }
  func.func @transform_3(%arg0: i32) -> (i32, i32, i32) {
    %c0_i32 = arith.constant 0 : i32
    %c0_i32_0 = arith.constant 0 : i32
    %c0_i32_1 = arith.constant 0 : i32
    %c0_i32_2 = arith.constant 0 : i32
    return %c0_i32, %c0_i32_0, %c0_i32_1 : i32, i32, i32
  }
  func.func @transform_4(%arg0: i32) -> (i32, i32) {
    %c0_i32 = arith.constant 0 : i32
    %c0_i32_0 = arith.constant 0 : i32
    %c0_i32_1 = arith.constant 0 : i32
    return %c0_i32, %c0_i32_0 : i32, i32
  }
  func.func @transform_5(%arg0: i32) -> (i32, i32, i32) {
    %c0_i32 = arith.constant 0 : i32
    %c0_i32_0 = arith.constant 0 : i32
    %c0_i32_1 = arith.constant 0 : i32
    return %arg0, %c0_i32, %c0_i32_0 : i32, i32, i32
  }
}

module attributes {stable_mosaic.version = 11 : i64} {
  func.func @_mlp_kernel(%arg0: i32, %arg1: memref<16x2304xbf16, #tpu.memory_space<vmem>>, %arg2: memref<2304x128xbf16, #tpu.memory_space<vmem>>, %arg3: memref<1x128xf32, #tpu.memory_space<vmem>>, %arg4: memref<128x128xbf16, #tpu.memory_space<vmem>>, %arg5: memref<1x128xf32, #tpu.memory_space<vmem>>, %arg6: memref<16x128xf32, #tpu.memory_space<vmem>>) attributes {dimension_semantics = [#tpu.dimension_semantics<parallel>], iteration_bounds = array<i64: 2>, scalar_prefetch = 0 : i64, scratch_operands = 0 : i64, tpu.core_type = #tpu.core_type<tc>, window_params = [{transform_indices = @transform_0, window_bounds = array<i64: 16, 2304>}, {pipeline_mode = #tpu.pipeline_mode<synchronous>, transform_indices = @transform_1, window_bounds = array<i64: 2304, 128>}, {pipeline_mode = #tpu.pipeline_mode<synchronous>, transform_indices = @transform_2, window_bounds = array<i64: 1, 128>}, {pipeline_mode = #tpu.pipeline_mode<synchronous>, transform_indices = @transform_3, window_bounds = array<i64: 128, 128>}, {pipeline_mode = #tpu.pipeline_mode<synchronous>, transform_indices = @transform_4, window_bounds = array<i64: 1, 128>}, {transform_indices = @transform_5, window_bounds = array<i64: 16, 128>}]} {
    %c0 = arith.constant 0 : index
    %c0_0 = arith.constant 0 : index
    %0 = vector.load %arg1[%c0, %c0_0] : memref<16x2304xbf16, #tpu.memory_space<vmem>>, vector<16x2304xbf16>
    %c0_1 = arith.constant 0 : index
    %c0_2 = arith.constant 0 : index
    %1 = vector.load %arg2[%c0_1, %c0_2] : memref<2304x128xbf16, #tpu.memory_space<vmem>>, vector<2304x128xbf16>
    %cst = arith.constant dense<0.000000e+00> : vector<16x128xf32>
    %2 = tpu.matmul %0, %1, %cst {dimension_numbers = #tpu.dot_dimension_numbers<[1], [0], [0], [1], [0, 0, 1, 1], [], []>} : vector<16x2304xbf16>, vector<2304x128xbf16>, vector<16x128xf32> -> vector<16x128xf32>
    %c0_3 = arith.constant 0 : index
    %c0_4 = arith.constant 0 : index
    %3 = vector.load %arg3[%c0_3, %c0_4] : memref<1x128xf32, #tpu.memory_space<vmem>>, vector<1x128xf32>
    %4 = vector.broadcast %3 : vector<1x128xf32> to vector<16x128xf32>
    %5 = arith.addf %2, %4 : vector<16x128xf32>
    %cst_5 = arith.constant 0.000000e+00 : f32
    %6 = vector.broadcast %cst_5 : f32 to vector<16x128xf32>
    %7 = arith.maximumf %5, %6 : vector<16x128xf32>
    %8 = arith.truncf %7 : vector<16x128xf32> to vector<16x128xbf16>
    %c0_6 = arith.constant 0 : index
    %c0_7 = arith.constant 0 : index
    %9 = vector.load %arg4[%c0_6, %c0_7] : memref<128x128xbf16, #tpu.memory_space<vmem>>, vector<128x128xbf16>
    %cst_8 = arith.constant dense<0.000000e+00> : vector<16x128xf32>
    %10 = tpu.matmul %8, %9, %cst_8 {dimension_numbers = #tpu.dot_dimension_numbers<[1], [0], [0], [1], [0, 0, 1, 1], [], []>} : vector<16x128xbf16>, vector<128x128xbf16>, vector<16x128xf32> -> vector<16x128xf32>
    %c0_9 = arith.constant 0 : index
    %c0_10 = arith.constant 0 : index
    %11 = vector.load %arg5[%c0_9, %c0_10] : memref<1x128xf32, #tpu.memory_space<vmem>>, vector<1x128xf32>
    %12 = vector.broadcast %11 : vector<1x128xf32> to vector<16x128xf32>
    %13 = arith.addf %10, %12 : vector<16x128xf32>
    %c0_11 = arith.constant 0 : index
    %c0_12 = arith.constant 0 : index
    %14 = vector.load %arg6[%c0_11, %c0_12] : memref<16x128xf32, #tpu.memory_space<vmem>>, vector<16x128xf32>
    tpu.vector_store %arg6[%c0_11, %c0_12], %13 {strides = array<i32>} : memref<16x128xf32, #tpu.memory_space<vmem>>, vector<16x128xf32>,
    return
  }
  func.func @transform_0(%arg0: i32) -> (i32, i32) {
    %c0_i32 = arith.constant 0 : i32
    %c0_i32_0 = arith.constant 0 : i32
    return %arg0, %c0_i32 : i32, i32
  }
  func.func @transform_1(%arg0: i32) -> (i32, i32) {
    %c0_i32 = arith.constant 0 : i32
    %c0_i32_0 = arith.constant 0 : i32
    %c0_i32_1 = arith.constant 0 : i32
    return %c0_i32, %c0_i32_0 : i32, i32
  }
  func.func @transform_2(%arg0: i32) -> (i32, i32) {
    %c0_i32 = arith.constant 0 : i32
    %c0_i32_0 = arith.constant 0 : i32
    %c0_i32_1 = arith.constant 0 : i32
    return %c0_i32, %c0_i32_0 : i32, i32
  }
  func.func @transform_3(%arg0: i32) -> (i32, i32) {
    %c0_i32 = arith.constant 0 : i32
    %c0_i32_0 = arith.constant 0 : i32
    %c0_i32_1 = arith.constant 0 : i32
    return %c0_i32, %c0_i32_0 : i32, i32
  }
  func.func @transform_4(%arg0: i32) -> (i32, i32) {
    %c0_i32 = arith.constant 0 : i32
    %c0_i32_0 = arith.constant 0 : i32
    %c0_i32_1 = arith.constant 0 : i32
    return %c0_i32, %c0_i32_0 : i32, i32
  }
  func.func @transform_5(%arg0: i32) -> (i32, i32) {
    %c0_i32 = arith.constant 0 : i32
    %c0_i32_0 = arith.constant 0 : i32
    return %arg0, %c0_i32 : i32, i32
  }
}

</mosaic_0001>

<bundles_post_ra>
// kernel: net_forward.3
= control target key start
LH: loop header
LB: loop body
LE: loop exit
PB: predicated region body
PF: predicated region fallthrough
CT: control target
= control target key end

     0   :  { %s2681_s18 = smov 0   ;;  %s3186_s0 = inlined_call_operand.vmem [shape: bf16[32,2304], index: 0, kind: input, shape index: {}]   ;;  %s3187_s1 = inlined_call_operand.vmem [shape: bf16[2304,128], index: 1, kind: input, shape index: {}]   ;;  %s3188_s2 = inlined_call_operand.vmem [shape: f32[1,128], index: 2, kind: input, shape index: {}]   ;;  %s3189_s3 = inlined_call_operand.vmem [shape: bf16[128,128], index: 3, kind: input, shape index: {}]   ;;  %s3190_s4 = inlined_call_operand.vmem [shape: f32[1,128], index: 4, kind: input, shape index: {}]   ;;  %s3191_s5 = inlined_call_operand.vmem [shape: f32[32,128], index: 5, kind: output, shape index: {}]  }
   0x1 LB: > { %s2041_s19 = sadd.s32 4294967295, %s2647_s18   ;;  %p2045_p0 = scmp.ge.s32.totalorder %s2647_s18, 1  ;;  %s2647_s18 = sphi %s2681_s18, %s15_s18  }
   0x2   : > { %p189_p1 = scmp.lt.s32.totalorder %s2647_s18, 3 }
   0x4   : > { %p190_p2 = pnand %p2045_p0, %p189_p1 }
   0x5   : > { %v2462_v0 = vld [vmem:[%s3187_s1 + $0x40] sm:$0xff] (!%p190_p2)   ;;  %v2466_v4 = vld [vmem:[%s3187_s1 + $0x48] sm:$0xff] (!%p190_p2)   ;;  %v2470_v8 = vld [vmem:[%s3187_s1 + $0x50] sm:$0xff] (!%p190_p2)   ;;  %s2046_s25 = sshll.u32 (!%p190_p2), %s2041_s19, 1  ;;  %vm2650_vm0 = vmmov (!%p190_p2), 0  }
   0x6   : > { %193 = sbr.rel (%p190_p2) target bundleno = 606 (0x25e), region = 40  ;;  %v2463_v1 = vld [vmem:[%s3187_s1] sm:$0xff] (!%p190_p2)   ;;  %2224 = vmatprep.subr.bf16.mxu0 (!%p190_p2), %v2462_v0  ;;  %v2467_v5 = vld [vmem:[%s3187_s1 + $0x8] sm:$0xff] (!%p190_p2)   ;;  %v2471_v9 = vld [vmem:[%s3187_s1 + $0x10] sm:$0xff] (!%p190_p2)   ;;  %p219_p3 = scmp.lt.s32.totalorder (!%p190_p2), %s2046_s25, 3 }
   0x7   : > { %v2464_v2 = vld [vmem:[%s3187_s1 + $0xc0] sm:$0xff] (!%p190_p2)   ;;  %2225 = vmatpush3.bf16.msra.mxu0 (!%p190_p2), %v2463_v1  ;;  %v2468_v6 = vld [vmem:[%s3187_s1 + $0xc8] sm:$0xff] (!%p190_p2)   ;;  %v2472_v10 = vld [vmem:[%s3187_s1 + $0xd0] sm:$0xff] (!%p190_p2)  }
   0x8   : > { %v2465_v3 = vld [vmem:[%s3187_s1 + $0x80] sm:$0xff] (!%p190_p2)   ;;  %2246 = vmatprep.subr.bf16.mxu1 (!%p190_p2), %v2464_v2  ;;  %2226 = vmatprep.subr.bf16.mxu0 (!%p190_p2), %v2466_v4  ;;  %v2469_v7 = vld [vmem:[%s3187_s1 + $0x88] sm:$0xff] (!%p190_p2)   ;;  %v2473_v11 = vld [vmem:[%s3187_s1 + $0x90] sm:$0xff] (!%p190_p2)  }
   0x9   : > { %2247 = vmatpush3.bf16.msra.mxu1 (!%p190_p2), %v2465_v3  ;;  %v2474_v12 = vld [vmem:[%s3187_s1 + $0x58] sm:$0xff] (!%p190_p2)   ;;  %v2478_v16 = vld [vmem:[%s3187_s1 + $0x60] sm:$0xff] (!%p190_p2)   ;;  %v2482_v20 = vld [vmem:[%s3187_s1 + $0x68] sm:$0xff] (!%p190_p2)  }
   0xa   : > { %2248 = vmatprep.subr.bf16.mxu1 (!%p190_p2), %v2468_v6  ;;  %v2475_v13 = vld [vmem:[%s3187_s1 + $0x18] sm:$0xff] (!%p190_p2)   ;;  %v2479_v17 = vld [vmem:[%s3187_s1 + $0x20] sm:$0xff] (!%p190_p2)   ;;  %v2483_v21 = vld [vmem:[%s3187_s1 + $0x28] sm:$0xff] (!%p190_p2)  }
   0xb   : > { %2227 = vmatpush3.bf16.msra.mxu0 (!%p190_p2), %v2467_v5  ;;  %v2476_v14 = vld [vmem:[%s3187_s1 + $0xd8] sm:$0xff] (!%p190_p2)   ;;  %v2480_v18 = vld [vmem:[%s3187_s1 + $0xe0] sm:$0xff] (!%p190_p2)   ;;  %v2484_v22 = vld [vmem:[%s3187_s1 + $0xe8] sm:$0xff] (!%p190_p2)  }
   0xc   : > { %2228 = vmatprep.subr.bf16.mxu0 (!%p190_p2), %v2470_v8  ;;  %v2477_v15 = vld [vmem:[%s3187_s1 + $0x98] sm:$0xff] (!%p190_p2)   ;;  %v2481_v19 = vld [vmem:[%s3187_s1 + $0xa0] sm:$0xff] (!%p190_p2)   ;;  %v2485_v23 = vld [vmem:[%s3187_s1 + $0xa8] sm:$0xff] (!%p190_p2)  }
   0xd   : > { %2249 = vmatpush3.bf16.msra.mxu1 %v2469_v7  ;;  %s3193_s25 = smov (!%p219_p3, %s2046_s25), 3  ;;  %v2486_v24 = vld [vmem:[%s3187_s1 + $0x70] sm:$0xff]   ;;  %v2490_v28 = vld [vmem:[%s3187_s1 + $0x78] sm:$0xff]   ;;  %v2497_v34 = vld [vmem:[%s3187_s1 + $0x140] sm:$0xff]  }
   0xe   : > { %2250 = vmatprep.subr.bf16.mxu1 %v2472_v10  ;;  %s2451_s24 = smul.u32 72, %s3193_s25  ;;  %v2487_v25 = vld [vmem:[%s3187_s1 + $0x30] sm:$0xff]   ;;  %v2491_v29 = vld [vmem:[%s3187_s1 + $0x38] sm:$0xff]   ;;  %v2501_v37 = vld [vmem:[%s3187_s1 + $0x100] sm:$0xff]   ;;  %s2049_s16 = sshll.u32 %s3193_s25, 3 }
   0xf   : > { %2229 = vmatpush3.bf16.msra.mxu0 %v2471_v9  ;;  %v2488_v26 = vld [vmem:[%s3187_s1 + $0xf0] sm:$0xff]   ;;  %v2492_v30 = vld [vmem:[%s3187_s1 + $0xf8] sm:$0xff]   ;;  %v2502_v38 = vld [vmem:[%s3187_s1 + $0x1c0] sm:$0xff]   ;;  %s229_s23 = scalar_lea.vmem %s3191_s5, %s2049_s16 }
  0x10   : > { %2230 = vmatprep.subr.bf16.mxu0 %v2474_v12  ;;  %v2489_v27 = vld [vmem:[%s3187_s1 + $0xb0] sm:$0xff]   ;;  %s2784_s10 = scalar_lea.vmem %s3186_s0, %s2451_s24  ;;  %v2496_v33 = vld [vmem:[%s3187_s1 + $0xb8] sm:$0xff]   ;;  %v2503_v39 = vld [vmem:[%s3187_s1 + $0x180] sm:$0xff]  }
  0x11   : > { %2251 = vmatpush3.bf16.msra.mxu1 %v2473_v11  ;;  %v2493_v31 = vld [vmem:[%s2784_s10] ss:$72 sps:$4 sm:$0xff]   ;;  %v2495_v32 = vld [vmem:[%s2784_s10 + $0x4] ss:$72 sps:$4 sm:$0xff]   ;;  %v2508_v44 = vld [vmem:[%s3187_s1 + $0x150] sm:$0xff]  }
  0x12   : > { %2252 = vmatprep.subr.bf16.mxu1 %v2476_v14  ;;  %1531 = vmatprep.mubr.bf16.mxu0 %v2495_v32  ;;  %v2498_v35 = vld [vmem:[%s2784_s10 + $0x8] ss:$72 sps:$4 sm:$0xff]   ;;  %v2500_v36 = vld [vmem:[%s2784_s10 + $0xc] ss:$72 sps:$4 sm:$0xff]   ;;  %v2512_v48 = vld [vmem:[%s3187_s1 + $0x158] sm:$0xff]  }
  0x13   : > { %2231 = vmatpush3.bf16.msra.mxu0 %v2475_v13  ;;  %1572 = vmatprep.mubr.bf16.mxu1 %v2500_v36  ;;  %v2504_v40 = vld [vmem:[%s3187_s1 + $0x148] sm:$0xff]   ;;  %v2509_v45 = vld [vmem:[%s3187_s1 + $0x110] sm:$0xff]   ;;  %v2513_v49 = vld [vmem:[%s3187_s1 + $0x118] sm:$0xff]  }
  0x14   : > { %2232 = vmatprep.subr.bf16.mxu0 %v2478_v16  ;;  %v2505_v41 = vld [vmem:[%s3187_s1 + $0x108] sm:$0xff]   ;;  %v2510_v46 = vld [vmem:[%s3187_s1 + $0x1d0] sm:$0xff]   ;;  %v2514_v50 = vld [vmem:[%s3187_s1 + $0x1d8] sm:$0xff]  }
  0x15   : > { %2253 = vmatpush3.bf16.msra.mxu1 %v2477_v15  ;;  %v2506_v42 = vld [vmem:[%s3187_s1 + $0x1c8] sm:$0xff]   ;;  %v2511_v47 = vld [vmem:[%s3187_s1 + $0x190] sm:$0xff]   ;;  %v2515_v51 = vld [vmem:[%s3187_s1 + $0x198] sm:$0xff]  }
  0x16   : > { %2254 = vmatprep.subr.bf16.mxu1 %v2480_v18  ;;  %v2507_v43 = vld [vmem:[%s3187_s1 + $0x188] sm:$0xff]   ;;  %v2516_v52 = vld [vmem:[%s3187_s1 + $0x160] sm:$0xff]   ;;  %v2524_v60 = vld [vmem:[%s3187_s1 + $0x170] sm:$0xff]  }
  0x17   : > { %2233 = vmatpush3.bf16.msra.mxu0 %v2479_v17  ;;  %v2517_v53 = vld [vmem:[%s3187_s1 + $0x120] sm:$0xff]   ;;  %v2520_v56 = vld [vmem:[%s3187_s1 + $0x168] sm:$0xff]   ;;  %v2525_v61 = vld [vmem:[%s3187_s1 + $0x130] sm:$0xff]  }
  0x18   : > { %2234 = vmatprep.subr.bf16.mxu0 %v2482_v20  ;;  %v2518_v54 = vld [vmem:[%s3187_s1 + $0x1e0] sm:$0xff]   ;;  %v2521_v57 = vld [vmem:[%s3187_s1 + $0x128] sm:$0xff]   ;;  %v2526_v62 = vld [vmem:[%s3187_s1 + $0x1f0] sm:$0xff]  }
  0x19   : > { %2255 = vmatpush3.bf16.msra.mxu1 %v2481_v19  ;;  %v2519_v55 = vld [vmem:[%s3187_s1 + $0x1a0] sm:$0xff]   ;;  %v2522_v58 = vld [vmem:[%s3187_s1 + $0x1e8] sm:$0xff]   ;;  %v2527_v63 = vld [vmem:[%s3187_s1 + $0x1b0] sm:$0xff]  }
  0x1a   : > { %2256 = vmatprep.subr.bf16.mxu1 %v2484_v22  ;;  %v2523_v59 = vld [vmem:[%s3187_s1 + $0x1a8] sm:$0xff]   ;;  %v2528_v0 = vld [vmem:[%s3187_s1 + $0x178] sm:$0xff]   ;;  %v2535_v6 = vld [vmem:[%s3187_s1 + $0x240] sm:$0xff]  }
  0x1b   : > { %2235 = vmatpush3.bf16.msra.mxu0 %v2483_v21  ;;  %v2529_v1 = vld [vmem:[%s3187_s1 + $0x138] sm:$0xff]   ;;  %v2539_v9 = vld [vmem:[%s3187_s1 + $0x200] sm:$0xff]   ;;  %v2542_v12 = vld [vmem:[%s3187_s1 + $0x248] sm:$0xff]  }
  0x1c   : > { %2236 = vmatprep.subr.bf16.mxu0 %v2486_v24  ;;  %v2530_v2 = vld [vmem:[%s3187_s1 + $0x1f8] sm:$0xff]   ;;  %v2540_v10 = vld [vmem:[%s3187_s1 + $0x2c0] sm:$0xff]   ;;  %v2543_v13 = vld [vmem:[%s3187_s1 + $0x208] sm:$0xff]  }
  0x1d   : > { %2257 = vmatpush3.bf16.msra.mxu1 %v2485_v23  ;;  %v2531_v3 = vld [vmem:[%s2784_s10 + $0x10] ss:$72 sps:$4 sm:$0xff]   ;;  %v2533_v4 = vld [vmem:[%s2784_s10 + $0x14] ss:$72 sps:$4 sm:$0xff]   ;;  %v2541_v11 = vld [vmem:[%s3187_s1 + $0x280] sm:$0xff]  }
  0x1e   : > { %2258 = vmatprep.subr.bf16.mxu1 %v2488_v26  ;;  %v2534_v5 = vld [vmem:[%s3187_s1 + $0x1b8] sm:$0xff]   ;;  %v2544_v14 = vld [vmem:[%s3187_s1 + $0x2c8] sm:$0xff]   ;;  %v2546_v16 = vld [vmem:[%s3187_s1 + $0x250] sm:$0xff]  }
  0x1f   : > { %2237 = vmatpush3.bf16.msra.mxu0 %v2487_v25  ;;  %v2536_v7 = vld [vmem:[%s2784_s10 + $0x18] ss:$72 sps:$4 sm:$0xff]   ;;  %v2538_v8 = vld [vmem:[%s2784_s10 + $0x1c] ss:$72 sps:$4 sm:$0xff]   ;;  %v2545_v15 = vld [vmem:[%s3187_s1 + $0x288] sm:$0xff]  }
  0x20   : > { %2238 = vmatprep.subr.bf16.mxu0 %v2490_v28  ;;  %v2547_v17 = vld [vmem:[%s3187_s1 + $0x210] sm:$0xff]   ;;  %v2550_v20 = vld [vmem:[%s3187_s1 + $0x258] sm:$0xff]   ;;  %v2554_v24 = vld [vmem:[%s3187_s1 + $0x260] sm:$0xff]  }
  0x21   : > { %2259 = vmatpush3.bf16.msra.mxu1 %v2489_v27  ;;  %v2548_v18 = vld [vmem:[%s3187_s1 + $0x2d0] sm:$0xff]   ;;  %v2551_v21 = vld [vmem:[%s3187_s1 + $0x218] sm:$0xff]   ;;  %v2555_v25 = vld [vmem:[%s3187_s1 + $0x220] sm:$0xff]  }
  0x22   : > { %2260 = vmatprep.subr.bf16.mxu1 %v2492_v30  ;;  %v2549_v19 = vld [vmem:[%s3187_s1 + $0x290] sm:$0xff]   ;;  %v2552_v22 = vld [vmem:[%s3187_s1 + $0x2d8] sm:$0xff]   ;;  %v2556_v26 = vld [vmem:[%s3187_s1 + $0x2e0] sm:$0xff]  }
  0x23   : > { %2239 = vmatpush3.bf16.msra.mxu0 %v2491_v29  ;;  %v2553_v23 = vld [vmem:[%s3187_s1 + $0x298] sm:$0xff]   ;;  %v2557_v27 = vld [vmem:[%s3187_s1 + $0x2a0] sm:$0xff]   ;;  %v2558_v28 = vld [vmem:[%s3187_s1 + $0x268] sm:$0xff]  }
  0x24   : > { %2268 = vmatprep.subr.bf16.mxu0 %v2497_v34  ;;  %v2559_v29 = vld [vmem:[%s3187_s1 + $0x228] sm:$0xff]   ;;  %v2562_v32 = vld [vmem:[%s3187_s1 + $0x270] sm:$0xff]   ;;  %v2566_v36 = vld [vmem:[%s3187_s1 + $0x278] sm:$0xff]  }
  0x25   : > { %2261 = vmatpush3.bf16.msra.mxu1 %v2496_v33  ;;  %v2560_v30 = vld [vmem:[%s3187_s1 + $0x2e8] sm:$0xff]   ;;  %v2563_v33 = vld [vmem:[%s3187_s1 + $0x230] sm:$0xff]  }
  0x26   : > { %1532 = vmatmul.mubr.bf16.vlgmr.msra.gmra.mrb[0].mxu0 %v2493_v31  ;;  %2290 = vmatprep.subr.bf16.mxu1 %v2502_v38  ;;  %v2561_v31 = vld [vmem:[%s3187_s1 + $0x2a8] sm:$0xff]   ;;  %v2564_v34 = vld [vmem:[%s3187_s1 + $0x2f0] sm:$0xff]   ;;  %v2568_v38 = vld [vmem:[%s3187_s1 + $0x2f8] sm:$0xff]  }
  0x27   : > { %2269 = vmatpush3.bf16.msra.mxu0 %v2501_v37  ;;  %1613 = vmatprep.mubr.bf16.mxu0 %v2533_v4  ;;  %v2567_v37 = vld [vmem:[%s3187_s1 + $0x238] sm:$0xff]   ;;  %v2600_v4 = vld [vmem:[%s3187_s1 + $0x370] sm:$0xff]  }
  0x28   : > { %1573 = vmatmul.mubr.bf16.vlgmr.msra.gmra.mrb[0].mxu1 %v2498_v35  ;;  %2270 = vmatprep.subr.bf16.mxu0 %v2504_v40  ;;  %v2565_v35 = vld [vmem:[%s3187_s1 + $0x2b0] sm:$0xff]   ;;  %v2571_v40 = vld [vmem:[%s2784_s10 + $0x24] ss:$72 sps:$4 sm:$0xff]  }
  0x29   : > { %2291 = vmatpush3.bf16.msra.mxu1 %v2503_v39  ;;  %1654 = vmatprep.mubr.bf16.mxu1 %v2538_v8  ;;  %v2569_v39 = vld [vmem:[%s2784_s10 + $0x20] ss:$72 sps:$4 sm:$0xff]   ;;  %v2604_v8 = vld [vmem:[%s3187_s1 + $0x378] sm:$0xff]  }
  0x2a   : > { %2292 = vmatprep.subr.bf16.mxu1 %v2506_v42  ;;  %v2573_v42 = vld [vmem:[%s3187_s1 + $0x340] sm:$0xff]  }
  0x2b   : > { %2271 = vmatpush3.bf16.msra.mxu0 %v2505_v41  ;;  %v2572_v41 = vld [vmem:[%s3187_s1 + $0x2b8] sm:$0xff]  }
  0x2c   : > { %2272 = vmatprep.subr.bf16.mxu0 %v2508_v44  ;;  %v2576_v44 = vld [vmem:[%s2784_s10 + $0x2c] ss:$72 sps:$4 sm:$0xff]  }
  0x2d   : > { %2293 = vmatpush3.bf16.msra.mxu1 %v2507_v43  ;;  %v2574_v43 = vld [vmem:[%s2784_s10 + $0x28] ss:$72 sps:$4 sm:$0xff]  }
  0x2e   : > { %2294 = vmatprep.subr.bf16.mxu1 %v2510_v46  ;;  %v2578_v46 = vld [vmem:[%s3187_s1 + $0x3c0] sm:$0xff]  }
  0x2f   : > { %2273 = vmatpush3.bf16.msra.mxu0 %v2509_v45  ;;  %v2577_v45 = vld [vmem:[%s3187_s1 + $0x300] sm:$0xff]  }
  0x30   : > { %2274 = vmatprep.subr.bf16.mxu0 %v2512_v48  ;;  %v2580_v48 = vld [vmem:[%s3187_s1 + $0x348] sm:$0xff]  }
  0x31   : > { %2295 = vmatpush3.bf16.msra.mxu1 %v2511_v47  ;;  %v2579_v47 = vld [vmem:[%s3187_s1 + $0x380] sm:$0xff]  }
  0x32   : > { %2296 = vmatprep.subr.bf16.mxu1 %v2514_v50  ;;  %v2582_v50 = vld [vmem:[%s3187_s1 + $0x3c8] sm:$0xff]  }
  0x33   : > { %2275 = vmatpush3.bf16.msra.mxu0 %v2513_v49  ;;  %v2581_v49 = vld [vmem:[%s3187_s1 + $0x308] sm:$0xff]  }
  0x34   : > { %2276 = vmatprep.subr.bf16.mxu0 %v2516_v52  ;;  %v2584_v52 = vld [vmem:[%s3187_s1 + $0x350] sm:$0xff]  }
  0x35   : > { %2297 = vmatpush3.bf16.msra.mxu1 %v2515_v51  ;;  %v2583_v51 = vld [vmem:[%s3187_s1 + $0x388] sm:$0xff]  }
  0x36   : > { %2298 = vmatprep.subr.bf16.mxu1 %v2518_v54  ;;  %v2586_v54 = vld [vmem:[%s3187_s1 + $0x3d0] sm:$0xff]  }
  0x37   : > { %2277 = vmatpush3.bf16.msra.mxu0 %v2517_v53  ;;  %v2585_v53 = vld [vmem:[%s3187_s1 + $0x310] sm:$0xff]  }
  0x38   : > { %2278 = vmatprep.subr.bf16.mxu0 %v2520_v56  ;;  %v2588_v56 = vld [vmem:[%s3187_s1 + $0x358] sm:$0xff]  }
  0x39   : > { %2299 = vmatpush3.bf16.msra.mxu1 %v2519_v55  ;;  %v2587_v55 = vld [vmem:[%s3187_s1 + $0x390] sm:$0xff]  }
  0x3a   : > { %2300 = vmatprep.subr.bf16.mxu1 %v2522_v58  ;;  %v2590_v58 = vld [vmem:[%s3187_s1 + $0x3d8] sm:$0xff]  }
  0x3b   : > { %2279 = vmatpush3.bf16.msra.mxu0 %v2521_v57  ;;  %v2589_v57 = vld [vmem:[%s3187_s1 + $0x318] sm:$0xff]  }
  0x3c   : > { %2280 = vmatprep.subr.bf16.mxu0 %v2524_v60  ;;  %v2592_v60 = vld [vmem:[%s3187_s1 + $0x360] sm:$0xff]  }
  0x3d   : > { %2301 = vmatpush3.bf16.msra.mxu1 %v2523_v59  ;;  %v2591_v59 = vld [vmem:[%s3187_s1 + $0x398] sm:$0xff]  }
  0x3e   : > { %2302 = vmatprep.subr.bf16.mxu1 %v2526_v62  ;;  %v2594_v62 = vld [vmem:[%s3187_s1 + $0x3e0] sm:$0xff]  }
  0x3f   : > { %2281 = vmatpush3.bf16.msra.mxu0 %v2525_v61  ;;  %v2593_v61 = vld [vmem:[%s3187_s1 + $0x320] sm:$0xff]  }
  0x40   : > { %2282 = vmatprep.subr.bf16.mxu0 %v2528_v0  ;;  %v2596_v0 = vld [vmem:[%s3187_s1 + $0x368] sm:$0xff]  }
  0x41   : > { %2303 = vmatpush3.bf16.msra.mxu1 %v2527_v63  ;;  %v2595_v63 = vld [vmem:[%s3187_s1 + $0x3a0] sm:$0xff]  }
  0x42   : > { %2304 = vmatprep.subr.bf16.mxu1 %v2530_v2  ;;  %v2598_v2 = vld [vmem:[%s3187_s1 + $0x3e8] sm:$0xff]  }
  0x43   : > { %2283 = vmatpush3.bf16.msra.mxu0 %v2529_v1  ;;  %v2597_v1 = vld [vmem:[%s3187_s1 + $0x328] sm:$0xff]  }
  0x44   : > { %2312 = vmatprep.subr.bf16.mxu0 %v2535_v6  ;;  %v2602_v6 = vld [vmem:[%s3187_s1 + $0x3f0] sm:$0xff]  }
  0x45   : > { %2305 = vmatpush3.bf16.msra.mxu1 %v2534_v5  ;;  %v2601_v5 = vld [vmem:[%s3187_s1 + $0x330] sm:$0xff]  }
  0x46   : > { %1614 = vmatmul.mubr.bf16.vlgmr.msra.gmra.mrb[4].mxu0 %v2531_v3  ;;  %2334 = vmatprep.subr.bf16.mxu1 %v2540_v10  ;;  %v2599_v3 = vld [vmem:[%s3187_s1 + $0x3a8] sm:$0xff]   ;;  %v2606_v10 = vld [vmem:[%s3187_s1 + $0x3f8] sm:$0xff]  }
  0x47   : > { %2313 = vmatpush3.bf16.msra.mxu0 %v2539_v9  ;;  %1695 = vmatprep.mubr.bf16.mxu0 %v2571_v40  ;;  %v2605_v9 = vld [vmem:[%s3187_s1 + $0x338] sm:$0xff]  }
  0x48   : > { %1655 = vmatmul.mubr.bf16.vlgmr.msra.gmra.mrb[4].mxu1 %v2536_v7  ;;  %2314 = vmatprep.subr.bf16.mxu0 %v2542_v12  ;;  %v2603_v7 = vld [vmem:[%s3187_s1 + $0x3b0] sm:$0xff]  }
  0x49   : > { %2335 = vmatpush3.bf16.msra.mxu1 %v2541_v11  ;;  %1736 = vmatprep.mubr.bf16.mxu1 %v2576_v44  ;;  %v2607_v11 = vld [vmem:[%s2784_s10 + $0x30] ss:$72 sps:$4 sm:$0xff]   ;;  %v2609_v12 = vld [vmem:[%s2784_s10 + $0x34] ss:$72 sps:$4 sm:$0xff]  }
  0x4a   : > { %2336 = vmatprep.subr.bf16.mxu1 %v2544_v14  ;;  %v2611_v14 = vld [vmem:[%s3187_s1 + $0x440] sm:$0xff]  }
  0x4b   : > { %2315 = vmatpush3.bf16.msra.mxu0 %v2543_v13  ;;  %v2610_v13 = vld [vmem:[%s3187_s1 + $0x3b8] sm:$0xff]  }
  0x4c   : > { %2316 = vmatprep.subr.bf16.mxu0 %v2546_v16  ;;  %v2614_v16 = vld [vmem:[%s2784_s10 + $0x3c] ss:$72 sps:$4 sm:$0xff]  }
  0x4d   : > { %2337 = vmatpush3.bf16.msra.mxu1 %v2545_v15  ;;  %v2612_v15 = vld [vmem:[%s2784_s10 + $0x38] ss:$72 sps:$4 sm:$0xff]  }
  0x4e   : > { %2338 = vmatprep.subr.bf16.mxu1 %v2548_v18  ;;  %v2616_v18 = vld [vmem:[%s3187_s1 + $0x448] sm:$0xff]  }
  0x4f   : > { %2317 = vmatpush3.bf16.msra.mxu0 %v2547_v17  ;;  %v2615_v17 = vld [vmem:[%s3187_s1 + $0x400] sm:$0xff]  }
  0x50   : > { %2318 = vmatprep.subr.bf16.mxu0 %v2550_v20  ;;  %v2618_v20 = vld [vmem:[%s3187_s1 + $0x450] sm:$0xff]  }
  0x51   : > { %2339 = vmatpush3.bf16.msra.mxu1 %v2549_v19  ;;  %v2617_v19 = vld [vmem:[%s3187_s1 + $0x408] sm:$0xff]  }
  0x52   : > { %2340 = vmatprep.subr.bf16.mxu1 %v2552_v22  ;;  %v2620_v22 = vld [vmem:[%s3187_s1 + $0x458] sm:$0xff]  }
  0x53   : > { %2319 = vmatpush3.bf16.msra.mxu0 %v2551_v21  ;;  %v2619_v21 = vld [vmem:[%s3187_s1 + $0x410] sm:$0xff]  }
  0x54   : > { %2320 = vmatprep.subr.bf16.mxu0 %v2554_v24  ;;  %v2622_v24 = vld [vmem:[%s3187_s1 + $0x460] sm:$0xff]  }
  0x55   : > { %2341 = vmatpush3.bf16.msra.mxu1 %v2553_v23  ;;  %v2621_v23 = vld [vmem:[%s3187_s1 + $0x418] sm:$0xff]  }
  0x56   : > { %2342 = vmatprep.subr.bf16.mxu1 %v2556_v26  ;;  %v2624_v26 = vld [vmem:[%s3187_s1 + $0x468] sm:$0xff]  }
  0x57   : > { %2321 = vmatpush3.bf16.msra.mxu0 %v2555_v25  ;;  %v2623_v25 = vld [vmem:[%s3187_s1 + $0x420] sm:$0xff]  }
  0x58   : > { %2322 = vmatprep.subr.bf16.mxu0 %v2558_v28  ;;  %v2625_v28 = vld [vmem:[%s3187_s1 + $0x428] sm:$0xff]  }
  0x59   : > { %2343 = vmatpush3.bf16.msra.mxu1 %v2557_v27  ;;  %v2632_v27 = vld [vmem:[%s2784_s10 + $0x44] ss:$72 sps:$4 sm:$0xff]  }
  0x5a   : > { %2344 = vmatprep.subr.bf16.mxu1 %v2560_v30  ;;  %v2627_v30 = vld [vmem:[%s3187_s1 + $0x430] sm:$0xff]  }
  0x5b   : > { %2323 = vmatpush3.bf16.msra.mxu0 %v2559_v29  ;;  %v2626_v29 = vld [vmem:[%s3187_s1 + $0x470] sm:$0xff]  }
  0x5c   : > { %2324 = vmatprep.subr.bf16.mxu0 %v2562_v32  ;;  %v2629_v32 = vld [vmem:[%s3187_s1 + $0x438] sm:$0xff]  }
  0x5d   : > { %2345 = vmatpush3.bf16.msra.mxu1 %v2561_v31  ;;  %v2628_v31 = vld [vmem:[%s3187_s1 + $0x478] sm:$0xff]  }
  0x5e   : > { %2346 = vmatprep.subr.bf16.mxu1 %v2564_v34  ;;  %v2633_v34 = vld [vmem:[%s3189_s3] sm:$0xff]  }
  0x5f   : > { %2325 = vmatpush3.bf16.msra.mxu0 %v2563_v33  ;;  %v2630_v33 = vld [vmem:[%s2784_s10 + $0x40] ss:$72 sps:$4 sm:$0xff]  }
  0x60   : > { %2326 = vmatprep.subr.bf16.mxu0 %v2566_v36  ;;  %v2634_v36 = vld [vmem:[%s3189_s3 + $0x8] sm:$0xff]  }
  0x61   : > { %2347 = vmatpush3.bf16.msra.mxu1 %v2565_v35  ;;  %v2649_v35 = vmov 0.0  }
  0x62   : > { %2348 = vmatprep.subr.bf16.mxu1 %v2568_v38  ;;  %v2636_v38 = vld [vmem:[%s3189_s3 + $0x18] sm:$0xff]  }
  0x63   : > { %2327 = vmatpush3.bf16.msra.mxu0 %v2567_v37  ;;  %v2635_v37 = vld [vmem:[%s3189_s3 + $0x10] sm:$0xff]  }
  0x64   : > { %2356 = vmatprep.subr.bf16.mxu0 %v2573_v42 }
  0x65   : > { %2349 = vmatpush3.bf16.msra.mxu1 %v2572_v41  ;;  %v2050_v41 = vld [vmem:[%s3188_s2] ss:$0 sm:$0xff] }
  0x66   : > { %1696 = vmatmul.mubr.bf16.vlgmr.msra.gmra.mrb[8].mxu0 %v2569_v39  ;;  %2378 = vmatprep.subr.bf16.mxu1 %v2578_v46  ;;  %v2637_v39 = vld [vmem:[%s3189_s3 + $0x20] sm:$0xff]  }
  0x67   : > { %2357 = vmatpush3.bf16.msra.mxu0 %v2577_v45  ;;  %1777 = vmatprep.mubr.bf16.mxu0 %v2609_v12 }
  0x68   : > { %1737 = vmatmul.mubr.bf16.vlgmr.msra.gmra.mrb[8].mxu1 %v2574_v43  ;;  %2358 = vmatprep.subr.bf16.mxu0 %v2580_v48 }
  0x69   : > { %2379 = vmatpush3.bf16.msra.mxu1 %v2579_v47  ;;  %1818 = vmatprep.mubr.bf16.mxu1 %v2614_v16 }
  0x6a   : > { %2380 = vmatprep.subr.bf16.mxu1 %v2582_v50 }
  0x6b   : > { %2359 = vmatpush3.bf16.msra.mxu0 %v2581_v49 }
  0x6c   : > { %2360 = vmatprep.subr.bf16.mxu0 %v2584_v52 }
  0x6d   : > { %2381 = vmatpush3.bf16.msra.mxu1 %v2583_v51 }
  0x6e   : > { %2382 = vmatprep.subr.bf16.mxu1 %v2586_v54 }
  0x6f   : > { %2361 = vmatpush3.bf16.msra.mxu0 %v2585_v53 }
  0x70   : > { %2362 = vmatprep.subr.bf16.mxu0 %v2588_v56 }
  0x71   : > { %2383 = vmatpush3.bf16.msra.mxu1 %v2587_v55 }
  0x72   : > { %2384 = vmatprep.subr.bf16.mxu1 %v2590_v58  ;;  %v2639_v58 = vld [vmem:[%s3189_s3 + $0x30] sm:$0xff]  }
  0x73   : > { %2363 = vmatpush3.bf16.msra.mxu0 %v2589_v57  ;;  %v2638_v57 = vld [vmem:[%s3189_s3 + $0x28] sm:$0xff]  }
  0x74   : > { %2364 = vmatprep.subr.bf16.mxu0 %v2592_v60 }
  0x75   : > { %2385 = vmatpush3.bf16.msra.mxu1 %v2591_v59  ;;  %v2640_v59 = vld [vmem:[%s3189_s3 + $0x38] sm:$0xff]  }
  0x76   : > { %2386 = vmatprep.subr.bf16.mxu1 %v2594_v62 }
  0x77   : > { %2365 = vmatpush3.bf16.msra.mxu0 %v2593_v61 }
  0x78   : > { %2366 = vmatprep.subr.bf16.mxu0 %v2596_v0 }
  0x79   : > { %2387 = vmatpush3.bf16.msra.mxu1 %v2595_v63 }
  0x7a   : > { %2388 = vmatprep.subr.bf16.mxu1 %v2598_v2 }
  0x7b   : > { %2367 = vmatpush3.bf16.msra.mxu0 %v2597_v1 }
  0x7c   : > { %2368 = vmatprep.subr.bf16.mxu0 %v2600_v4 }
  0x7d   : > { %2389 = vmatpush3.bf16.msra.mxu1 %v2599_v3 }
  0x7e   : > { %2390 = vmatprep.subr.bf16.mxu1 %v2602_v6 }
  0x7f   : > { %2369 = vmatpush3.bf16.msra.mxu0 %v2601_v5 }
  0x80   : > { %2370 = vmatprep.subr.bf16.mxu0 %v2604_v8 }
  0x81   : > { %2391 = vmatpush3.bf16.msra.mxu1 %v2603_v7 }
  0x82   : > { %2392 = vmatprep.subr.bf16.mxu1 %v2606_v10 }
  0x83   : > { %2371 = vmatpush3.bf16.msra.mxu0 %v2605_v9 }
  0x84   : > { %2400 = vmatprep.subr.bf16.mxu0 %v2611_v14 }
  0x85   : > { %2393 = vmatpush3.bf16.msra.mxu1 %v2610_v13 }
  0x86   : > { %1778 = vmatmul.mubr.bf16.vlgmr.msra.gmra.mrb[12].mxu0 %v2607_v11  ;;  %2431 = vmatprep.subr.bf16.mxu1 %v2649_v35 }
  0x87   : > { %2401 = vmatpush3.bf16.msra.mxu0 %v2615_v17  ;;  %1859 = vmatprep.mubr.bf16.mxu0 %v2632_v27 }
  0x88   : > { %1819 = vmatmul.mubr.bf16.vlgmr.msra.gmra.mrb[12].mxu1 %v2612_v15  ;;  %2402 = vmatprep.subr.bf16.mxu0 %v2616_v18 }
  0x89   : > { %2432 = vmatpush3.bf16.msra.mxu1 %v2633_v34  ;;  %2447 = vmatprep.mubr.msk.bf16.mxu1 %vm2650_vm0, %v2649_v35 }
  0x8a   : > { %2433 = vmatprep.subr.bf16.mxu1 %v2649_v35 }
  0x8b   : > { %2403 = vmatpush3.bf16.msra.mxu0 %v2617_v19 }
  0x8c   : > { %2404 = vmatprep.subr.bf16.mxu0 %v2618_v20 }
  0x8d   : > { %2434 = vmatpush3.bf16.msra.mxu1 %v2634_v36 }
  0x8e   : > { %2435 = vmatprep.subr.bf16.mxu1 %v2649_v35 }
  0x8f   : > { %2405 = vmatpush3.bf16.msra.mxu0 %v2619_v21 }
  0x90   : > { %2406 = vmatprep.subr.bf16.mxu0 %v2620_v22 }
  0x91   : > { %2436 = vmatpush3.bf16.msra.mxu1 %v2635_v37 }
  0x92   : > { %2437 = vmatprep.subr.bf16.mxu1 %v2649_v35 }
  0x93   : > { %2407 = vmatpush3.bf16.msra.mxu0 %v2621_v23 }
  0x94   : > { %2408 = vmatprep.subr.bf16.mxu0 %v2622_v24 }
  0x95   : > { %2438 = vmatpush3.bf16.msra.mxu1 %v2636_v38 }
  0x96   : > { %2439 = vmatprep.subr.bf16.mxu1 %v2649_v35 }
  0x97   : > { %2409 = vmatpush3.bf16.msra.mxu0 %v2623_v25 }
  0x98   : > { %2410 = vmatprep.subr.bf16.mxu0 %v2624_v26 }
  0x99   : > { %2440 = vmatpush3.bf16.msra.mxu1 %v2637_v39 }
  0x9a   : > { %2441 = vmatprep.subr.bf16.mxu1 %v2649_v35 }
  0x9b   : > { %2411 = vmatpush3.bf16.msra.mxu0 %v2625_v28 }
  0x9c   : > { %2412 = vmatprep.subr.bf16.mxu0 %v2626_v29 }
  0x9d   : > { %2442 = vmatpush3.bf16.msra.mxu1 %v2638_v57 }
  0x9e   : > { %2443 = vmatprep.subr.bf16.mxu1 %v2649_v35 }
  0x9f   : > { %2413 = vmatpush3.bf16.msra.mxu0 %v2627_v30 }
  0xa0   : > { %2414 = vmatprep.subr.bf16.mxu0 %v2628_v31 }
  0xa1   : > { %2444 = vmatpush3.bf16.msra.mxu1 %v2639_v58 }
  0xa2   : > { %2445 = vmatprep.subr.bf16.mxu1 %v2649_v35 }
  0xa3   : > { %2415 = vmatpush3.bf16.msra.mxu0 %v2629_v32 }
  0xa5   : > { %2446 = vmatpush3.bf16.msra.mxu1 %v2640_v59 }
  0xa6   : > { %1860 = vmatmul.mubr.bf16.vlgmr.msra.gmra.mrb[16].mxu0 %v2630_v33 }
  0xf9   : > { %v2240_v40 = vpop.f32.mrb[0].mxu0 }
  0xfa   : > { %v2241_v42 = vpop.f32.mrb[1].mxu0 }
  0xfb   : > { %v2242_v43 = vadd.f32 %v2241_v42, %v2240_v40  ;;  %v2243_v44 = vpop.f32.mrb[2].mxu0  ;;  %v2262_v45 = vpop.f32.mrb[0].mxu1 }
  0xfc   : > { %v2244_v46 = vpop.f32.mrb[3].mxu0  ;;  %v2263_v49 = vpop.f32.mrb[1].mxu1 }
  0xfd   : > { %v1534_v47 = vadd.f32 %v2242_v43, %v2050_v41  ;;  %v2245_v48 = vadd.f32 %v2244_v46, %v2243_v44  ;;  %v2264_v50 = vadd.f32 %v2263_v49, %v2262_v45  ;;  %v2265_v51 = vpop.f32.mrb[2].mxu1 }
  0xfe   : > { %v2266_v53 = vpop.f32.mrb[3].mxu1 }
  0xff   : > { %v1537_v52 = vadd.f32 %v2245_v48, %v2050_v41  ;;  %v1575_v54 = vadd.f32 %v2264_v50, %v1534_v47  ;;  %v2267_v55 = vadd.f32 %v2266_v53, %v2265_v51 }
 0x101   : > { %v1578_v56 = vadd.f32 %v2267_v55, %v1537_v52  ;;  %v2213_v55 = vld [vmem:[%s3190_s4] ss:$0 sm:$0xff] }
 0x119   : > { %v2284_v60 = vpop.f32.mrb[4].mxu0 }
 0x11a   : > { %v2285_v61 = vpop.f32.mrb[5].mxu0 }
 0x11b   : > { %v2286_v62 = vadd.f32 %v2285_v61, %v2284_v60  ;;  %v2287_v63 = vpop.f32.mrb[6].mxu0  ;;  %v2306_v2 = vpop.f32.mrb[4].mxu1 }
 0x11c   : > { %v2288_v0 = vpop.f32.mrb[7].mxu0  ;;  %v2307_v4 = vpop.f32.mrb[5].mxu1 }
 0x11d   : > { %v1616_v1 = vadd.f32 %v2286_v62, %v1575_v54  ;;  %v2289_v3 = vadd.f32 %v2288_v0, %v2287_v63  ;;  %v2308_v6 = vadd.f32 %v2307_v4, %v2306_v2  ;;  %v2309_v7 = vpop.f32.mrb[6].mxu1 }
 0x11e   : > { %v2310_v8 = vpop.f32.mrb[7].mxu1 }
 0x11f   : > { %v1619_v5 = vadd.f32 %v2289_v3, %v1578_v56  ;;  %v1657_v9 = vadd.f32 %v2308_v6, %v1616_v1  ;;  %v2311_v10 = vadd.f32 %v2310_v8, %v2309_v7 }
 0x121   : > { %v1660_v11 = vadd.f32 %v2311_v10, %v1619_v5 }
 0x139   : > { %v2328_v12 = vpop.f32.mrb[8].mxu0 }
 0x13a   : > { %v2329_v13 = vpop.f32.mrb[9].mxu0 }
 0x13b   : > { %v2330_v14 = vadd.f32 %v2329_v13, %v2328_v12  ;;  %v2331_v15 = vpop.f32.mrb[10].mxu0  ;;  %v2350_v16 = vpop.f32.mrb[8].mxu1 }
 0x13c   : > { %v2332_v17 = vpop.f32.mrb[11].mxu0  ;;  %v2351_v20 = vpop.f32.mrb[9].mxu1 }
 0x13d   : > { %v1698_v18 = vadd.f32 %v2330_v14, %v1657_v9  ;;  %v2333_v19 = vadd.f32 %v2332_v17, %v2331_v15  ;;  %v2352_v21 = vadd.f32 %v2351_v20, %v2350_v16  ;;  %v2353_v22 = vpop.f32.mrb[10].mxu1 }
 0x13e   : > { %v2354_v24 = vpop.f32.mrb[11].mxu1 }
 0x13f   : > { %v1701_v23 = vadd.f32 %v2333_v19, %v1660_v11  ;;  %v1739_v25 = vadd.f32 %v2352_v21, %v1698_v18  ;;  %v2355_v26 = vadd.f32 %v2354_v24, %v2353_v22 }
 0x141   : > { %v1742_v27 = vadd.f32 %v2355_v26, %v1701_v23 }
 0x159   : > { %v2372_v28 = vpop.f32.mrb[12].mxu0 }
 0x15a   : > { %v2373_v29 = vpop.f32.mrb[13].mxu0 }
 0x15b   : > { %v2374_v30 = vadd.f32 %v2373_v29, %v2372_v28  ;;  %v2375_v31 = vpop.f32.mrb[14].mxu0  ;;  %v2394_v32 = vpop.f32.mrb[12].mxu1 }
 0x15c   : > { %v2376_v33 = vpop.f32.mrb[15].mxu0  ;;  %v2395_v36 = vpop.f32.mrb[13].mxu1 }
 0x15d   : > { %v1780_v34 = vadd.f32 %v2374_v30, %v1739_v25  ;;  %v2377_v35 = vadd.f32 %v2376_v33, %v2375_v31  ;;  %v2396_v37 = vadd.f32 %v2395_v36, %v2394_v32  ;;  %v2397_v38 = vpop.f32.mrb[14].mxu1 }
 0x15e   : > { %v2398_v40 = vpop.f32.mrb[15].mxu1 }
 0x15f   : > { %v1783_v39 = vadd.f32 %v2377_v35, %v1742_v27  ;;  %v1821_v41 = vadd.f32 %v2396_v37, %v1780_v34  ;;  %v2399_v42 = vadd.f32 %v2398_v40, %v2397_v38 }
 0x161   : > { %v1824_v43 = vadd.f32 %v2399_v42, %v1783_v39 }
 0x179   : > { %v2416_v44 = vpop.f32.mrb[16].mxu0 }
 0x17a   : > { %v2417_v45 = vpop.f32.mrb[17].mxu0 }
 0x17b   : > { %v2418_v46 = vadd.f32 %v2417_v45, %v2416_v44  ;;  %v2419_v47 = vpop.f32.mrb[18].mxu0 }
 0x17c   : > { %v2420_v48 = vpop.f32.mrb[19].mxu0 }
 0x17d   : > { %v1862_v49 = vadd.f32 %v2418_v46, %v1821_v41  ;;  %v2421_v50 = vadd.f32 %v2420_v48, %v2419_v47 }
 0x17f   : > { %v1865_v51 = vadd.f32 %v2421_v50, %v1824_v43  ;;  %v1868_v52 = vmax.f32 %v1862_v49, 0.0 }
 0x181   : > { %v1869_v53 = vmax.f32 %v1865_v51, 0.0 }
 0x183   : > { %v1870_v54 = vpack.c.bf16 %v1869_v53, %v1868_v52 }
 0x185   : > { %2448 = vmatmul.mubr.bf16.vlgmr.msra.gmra.mrb[16].mxu1 %v1870_v54 }
 0x258   : > { %v1976_v56 = vpop.f32.mrb[16].mxu1 }
 0x259   : > { %v1977_v57 = vadd.f32 %v2213_v55, %v1976_v56  ;;  %v2449_v58 = vpop.f32.mrb[17].mxu1 }
 0x25a   : > { %v1979_v59 = vpop.f32.mrb[18].mxu1 }
 0x25b   : > { %1983 = vst [vmem:[%s229_s23] sm:$0xff] %v1977_v57  ;;  %v1980_v60 = vadd.f32 %v2213_v55, %v1979_v59  ;;  %v2450_v61 = vpop.f32.mrb[19].mxu1 }
 0x25d   : > { %1984 = vst [vmem:[%s229_s23 + $0x8] sm:$0xff] %v1980_v60 }
 0x25e PF: > { %s15_s18 = sadd.s32 1, %s2647_s18  }
 0x25f   : > { %p12_p4 = scmp.ge.s32.totalorder %s15_s18, 4  }
 0x261   :  { %14 = sbr.rel (!%p12_p4) target bundleno = 1 (0x1), region = 70 }

// kernel: net_forward.2
= control target key start
LH: loop header
LB: loop body
LE: loop exit
PB: predicated region body
PF: predicated region fallthrough
CT: control target
= control target key end

     0   :  { %s3236_s18 = smov 0   ;;  %s3941_s0 = inlined_call_operand.vmem [shape: bf16[2,296,32], index: 0, kind: input, shape index: {}]   ;;  %s3942_s1 = inlined_call_operand.vmem [shape: bf16[32,32], index: 1, kind: input, shape index: {}]   ;;  %s3943_s2 = inlined_call_operand.vmem [shape: f32[1,32], index: 2, kind: input, shape index: {}]   ;;  %s3944_s3 = inlined_call_operand.vmem [shape: bf16[3,96,64], index: 3, kind: input, shape index: {}]   ;;  %s3945_s4 = inlined_call_operand.vmem [shape: f32[1,64], index: 4, kind: input, shape index: {}]   ;;  %s3946_s5 = inlined_call_operand.vmem [shape: bf16[2,18,128], index: 5, kind: output, shape index: {}]  }
   0x1 LB: > { %s2627_s19 = sadd.s32 4294967295, %s3199_s18   ;;  %p2631_p0 = scmp.ge.s32.totalorder %s3199_s18, 1  ;;  %s3199_s18 = sphi %s3236_s18, %s15_s18  }
   0x2   : > { %p187_p1 = scmp.lt.s32.totalorder %s3199_s18, 3 }
   0x4   : > { %p188_p2 = pnand %p2631_p0, %p187_p1 }
   0x5   : > { %v3154_v0 = vld [vmem:[%s3942_s1] sm:$0xff] (!%p188_p2)   ;;  %v3201_v1 = vmov (!%p188_p2), 0.0   ;;  %v3155_v2 = vld [vmem:[%s3942_s1 + $0x8] sm:$0xff] (!%p188_p2)   ;;  %vm3202_vm0 = vmmov (!%p188_p2), 0   ;;  %p215_p3 = scmp.lt.s32.totalorder (!%p188_p2), %s2627_s19, 1  ;;  %vm379_vm1 = vcmask (!%p188_p2), 261120  }
   0x6   : > { %191 = sbr.rel (%p188_p2) target bundleno = 981 (0x3d5), region = 40  ;;  %2867 = vmatprep.subr.bf16.mxu0 (!%p188_p2), %v3201_v1  ;;  %2871 = vmatprep.mubr.msk.bf16.mxu0 (!%p188_p2), %vm3202_vm0, %v3201_v1  ;;  %v3339_v22 = vld [vmem:[%s3943_s2] ss:$0 sm:$0xff] (!%p188_p2)  ;;  %vm936_vm2 = vcmask (!%p188_p2), 1046528   ;;  %vm695_vm3 = vsmask.f32 (!%p188_p2), 7424 }
   0x7   : > { %2868 = vmatpush3.bf16.msra.mxu0 (!%p188_p2), %v3154_v0  ;;  %s3203_s17 = smov (!%p188_p2), 64   ;;  %s3204_s20 = smov (!%p188_p2), 32   ;;  %vm898_vm4 = vcmask (!%p188_p2), 523520   ;;  %vm1028_vm5 = vcmask (!%p188_p2), 785920   ;;  %vm1125_vm6 = vcmask (!%p188_p2), 785408   ;;  %vm1960_vm7 = vcmask (!%p188_p2), 1040384  }
   0x8   : > { %2869 = vmatprep.subr.bf16.mxu0 (!%p188_p2), %v3201_v1  ;;  %vm1967_vm8 = vcmask (!%p188_p2), 1041408   ;;  %vm2430_vm9 = vcmask (!%p188_p2), 516096   ;;  %vm2427_vm10 = vcmask (!%p188_p2), 519168   ;;  %vm2567_vm11 = vcmask (!%p188_p2), 1043968  }
   0x9   : > { %vm2570_vm12 = vcmask (!%p188_p2), 1040896  }
   0xb   : > { %2870 = vmatpush3.bf16.msra.mxu0 (!%p188_p2), %v3155_v2 }
   0xd   : > { %s3948_s19 = smov (!%p215_p3, %s2627_s19), 1 }
   0xe   : > { %s3139_s24 = smul.u32 148, %s3948_s19 }
   0xf   : > { %s3140_s25 = smul.u32 12, %s3948_s19 }
  0x10   : > { %s3260_s27 = scalar_lea.vmem %s3941_s0, %s3139_s24 }
  0x11   : > { %v3156_v3 = vld [vmem:[%s3260_s27] sm:$0xff]   ;;  %v3157_v4 = vld [vmem:[%s3260_s27 + $0x8] sm:$0xff]   ;;  %v3158_v5 = vld [vmem:[%s3260_s27 + $0x10] sm:$0xff]  }
  0x12   : > { %2872 = vmatmul.mubr.msk.bf16.vlgmr.msra.gmra.mrb[0].mxu0 %vm379_vm1, %v3156_v3  ;;  %v3159_v6 = vld [vmem:[%s3260_s27 + $0x18] sm:$0xff]   ;;  %v3160_v7 = vld [vmem:[%s3260_s27 + $0x20] sm:$0xff]   ;;  %v3161_v8 = vld [vmem:[%s3260_s27 + $0x28] sm:$0xff]  }
  0x13   : > { %2875 = vmatprep.mubr.msk.bf16.mxu0 %vm3202_vm0, %v3201_v1  ;;  %v3162_v9 = vld [vmem:[%s3260_s27 + $0x30] sm:$0xff]   ;;  %v3163_v10 = vld [vmem:[%s3260_s27 + $0x38] sm:$0xff]   ;;  %v3164_v11 = vld [vmem:[%s3260_s27 + $0x40] sm:$0xff]  }
  0x14   : > { %v3165_v12 = vld [vmem:[%s3260_s27 + $0x48] sm:$0xff]   ;;  %v3166_v13 = vld [vmem:[%s3260_s27 + $0x50] sm:$0xff]   ;;  %v3167_v14 = vld [vmem:[%s3260_s27 + $0x58] sm:$0xff]  }
  0x15   : > { %v3168_v15 = vld [vmem:[%s3260_s27 + $0x60] sm:$0xff]   ;;  %v3169_v16 = vld [vmem:[%s3260_s27 + $0x68] sm:$0xff]   ;;  %v3170_v17 = vld [vmem:[%s3260_s27 + $0x70] sm:$0xff]  }
  0x16   : > { %v3171_v18 = vld [vmem:[%s3260_s27 + $0x78] sm:$0xff]   ;;  %v3172_v19 = vld [vmem:[%s3260_s27 + $0x80] sm:$0xff]   ;;  %v3173_v20 = vld [vmem:[%s3260_s27 + $0x88] sm:$0xff]  }
  0x17   : > { %v3174_v21 = vld [vmem:[%s3260_s27 + $0x90] ss:$0 sps:$4 sm:$0xff]   ;;  %s224_s27 = scalar_lea.vmem %s3946_s5, %s3140_s25 }
  0x1a   : > { %2876 = vmatmul.mubr.msk.bf16.gmra.mrb[4].mxu0 %vm379_vm1, %v3157_v4 }
  0x1b   : > { %2879 = vmatprep.mubr.msk.bf16.mxu0 %vm3202_vm0, %v3201_v1 }
  0x22   : > { %2880 = vmatmul.mubr.msk.bf16.gmra.mrb[8].mxu0 %vm379_vm1, %v3158_v5 }
  0x23   : > { %2883 = vmatprep.mubr.msk.bf16.mxu0 %vm3202_vm0, %v3201_v1 }
  0x2a   : > { %2884 = vmatmul.mubr.msk.bf16.gmra.mrb[12].mxu0 %vm379_vm1, %v3159_v6 }
  0x2b   : > { %2887 = vmatprep.mubr.msk.bf16.mxu0 %vm3202_vm0, %v3201_v1 }
  0x32   : > { %2888 = vmatmul.mubr.msk.bf16.gmra.mrb[16].mxu0 %vm379_vm1, %v3160_v7 }
  0x33   : > { %2891 = vmatprep.mubr.msk.bf16.mxu0 %vm3202_vm0, %v3201_v1 }
  0x3a   : > { %2892 = vmatmul.mubr.msk.bf16.gmra.mrb[20].mxu0 %vm379_vm1, %v3161_v8 }
  0x3b   : > { %2895 = vmatprep.mubr.msk.bf16.mxu0 %vm3202_vm0, %v3201_v1 }
  0x42   : > { %2896 = vmatmul.mubr.msk.bf16.gmra.mrb[24].mxu0 %vm379_vm1, %v3162_v9 }
  0x43   : > { %2899 = vmatprep.mubr.msk.bf16.mxu0 %vm3202_vm0, %v3201_v1 }
  0x4a   : > { %2900 = vmatmul.mubr.msk.bf16.gmra.mrb[28].mxu0 %vm379_vm1, %v3163_v10 }
  0x4b   : > { %2903 = vmatprep.mubr.msk.bf16.mxu0 %vm3202_vm0, %v3201_v1 }
  0x52   : > { %2904 = vmatmul.mubr.msk.bf16.gmra.mrb[32].mxu0 %vm379_vm1, %v3164_v11 }
  0x53   : > { %2907 = vmatprep.mubr.msk.bf16.mxu0 %vm3202_vm0, %v3201_v1 }
  0x5a   : > { %2908 = vmatmul.mubr.msk.bf16.gmra.mrb[36].mxu0 %vm379_vm1, %v3165_v12 }
  0x5b   : > { %2911 = vmatprep.mubr.msk.bf16.mxu0 %vm3202_vm0, %v3201_v1 }
  0x62   : > { %2912 = vmatmul.mubr.msk.bf16.gmra.mrb[40].mxu0 %vm379_vm1, %v3166_v13 }
  0x63   : > { %2915 = vmatprep.mubr.msk.bf16.mxu0 %vm3202_vm0, %v3201_v1 }
  0x6a   : > { %2916 = vmatmul.mubr.msk.bf16.gmra.mrb[44].mxu0 %vm379_vm1, %v3167_v14 }
  0x6b   : > { %2919 = vmatprep.mubr.msk.bf16.mxu0 %vm3202_vm0, %v3201_v1 }
  0x72   : > { %2920 = vmatmul.mubr.msk.bf16.gmra.mrb[48].mxu0 %vm379_vm1, %v3168_v15 }
  0x73   : > { %2923 = vmatprep.mubr.msk.bf16.mxu0 %vm3202_vm0, %v3201_v1 }
  0x7a   : > { %2924 = vmatmul.mubr.msk.bf16.gmra.mrb[52].mxu0 %vm379_vm1, %v3169_v16 }
  0x7b   : > { %2927 = vmatprep.mubr.msk.bf16.mxu0 %vm3202_vm0, %v3201_v1 }
  0x82   : > { %2928 = vmatmul.mubr.msk.bf16.gmra.mrb[56].mxu0 %vm379_vm1, %v3170_v17 }
  0x83   : > { %2931 = vmatprep.mubr.msk.bf16.mxu0 %vm3202_vm0, %v3201_v1 }
  0x8a   : > { %2932 = vmatmul.mubr.msk.bf16.gmra.mrb[60].mxu0 %vm379_vm1, %v3171_v18 }
  0x8b   : > { %2935 = vmatprep.mubr.msk.bf16.mxu0 %vm3202_vm0, %v3201_v1 }
  0x92   : > { %2936 = vmatmul.mubr.msk.bf16.gmra.mrb[64].mxu0 %vm379_vm1, %v3172_v19 }
  0x93   : > { %2939 = vmatprep.mubr.msk.bf16.mxu0 %vm3202_vm0, %v3201_v1 }
  0x9a   : > { %2940 = vmatmul.mubr.msk.bf16.gmra.mrb[68].mxu0 %vm379_vm1, %v3173_v20 }
  0x9b   : > { %2943 = vmatprep.mubr.msk.bf16.mxu0 %vm3202_vm0, %v3201_v1 }
  0xa2   : > { %2944 = vmatmul.mubr.msk.bf16.gmra.mrb[72].mxu0 %vm379_vm1, %v3174_v21 }
  0xe5   : > { %v471_v23 = vpop.f32.mrb[0].mxu0 }
  0xe6   : > { %v472_v24 = vadd.f32 %v3339_v22, %v471_v23  ;;  %v2873_v25 = vpop.f32.mrb[1].mxu0 }
  0xe7   : > { %v474_v26 = vpop.f32.mrb[2].mxu0 }
  0xe8   : > { %v475_v27 = vadd.f32 %v3339_v22, %v474_v26  ;;  %v2874_v28 = vpop.f32.mrb[3].mxu0  ;;  %v621_v29 = vmax.f32 %v472_v24, 0.0 }
  0xea   : > { %v622_v30 = vmax.f32 %v475_v27, 0.0 }
  0xec   : > { %v658_v31 = vpack.c.bf16 %v622_v30, %v621_v29 }
  0xed   : > { %v479_v32 = vpop.f32.mrb[4].mxu0 }
  0xee   : > { %676 = vst.msk [vmem:[#allocation2] sm:$0xff] %vm379_vm1, %v658_v31  ;;  %v480_v33 = vadd.f32 %v3339_v22, %v479_v32  ;;  %v2877_v34 = vpop.f32.mrb[5].mxu0  ;;  %v699_v38 = vshll.u32 %v658_v31, 16  ;;  %v697_v44 = vshrl.u32 %v658_v31, 16  ;;  %v937_v48 = vrot.slane %v658_v31, 1 }
  0xef   : > { %v482_v35 = vpop.f32.mrb[6].mxu0 }
  0xf0   : > { %v483_v36 = vadd.f32 %v3339_v22, %v482_v35  ;;  %v2878_v37 = vpop.f32.mrb[7].mxu0  ;;  %v623_v39 = vmax.f32 %v480_v33, 0.0  ;;  %v701_v42 = vrot.slane %v699_v38, 1 }
  0xf2   : > { %v624_v40 = vmax.f32 %v483_v36, 0.0  ;;  %v702_v53 = vor.u32 %v701_v42, %v697_v44 }
  0xf4   : > { %v659_v41 = vpack.c.bf16 %v624_v40, %v623_v39 }
  0xf5   : > { %v487_v43 = vpop.f32.mrb[8].mxu0 }
  0xf6   : > { %677 = vst.msk [vmem:[#allocation2 + $0x8] sm:$0xff] %vm379_vm1, %v659_v41  ;;  %v488_v45 = vadd.f32 %v3339_v22, %v487_v43  ;;  %v2881_v46 = vpop.f32.mrb[9].mxu0  ;;  %v704_v47 = vshll.u32 %v659_v41, 16  ;;  %v938_v49 = vrot.slane %v659_v41, 1  ;;  %v708_v0 = vshrl.u32 %v659_v41, 16 }
  0xf7   : > { %v490_v50 = vpop.f32.mrb[10].mxu0 }
  0xf8   : > { %v491_v51 = vadd.f32 %v3339_v22, %v490_v50  ;;  %v2882_v52 = vpop.f32.mrb[11].mxu0  ;;  %v706_v54 = vrot.slane %v704_v47, 1  ;;  %v3350_v55 = vsel %vm936_vm2, %v937_v48, %v938_v49  ;;  %v625_v56 = vmax.f32 %v488_v45, 0.0 }
  0xfa   : > { %v626_v57 = vmax.f32 %v491_v51, 0.0  ;;  %v3353_v58 = vsel %vm695_vm3, %v702_v53, %v706_v54  ;;  %v710_v6 = vor.u32 %v708_v0, %v706_v54 }
  0xfc   : > { %v660_v59 = vpack.c.bf16 %v626_v57, %v625_v56 }
  0xfd   : > { %v495_v60 = vpop.f32.mrb[12].mxu0 }
  0xfe   : > { %678 = vst.msk [vmem:[#allocation2 + $0x10] sm:$0xff] %vm379_vm1, %v660_v59  ;;  %v496_v61 = vadd.f32 %v3339_v22, %v495_v60  ;;  %v2885_v62 = vpop.f32.mrb[13].mxu0  ;;  %v712_v63 = vshll.u32 %v660_v59, 16  ;;  %v940_v1 = vrot.slane %v660_v59, 1  ;;  %v716_v15 = vshrl.u32 %v660_v59, 16 }
  0xff   : > { %v498_v2 = vpop.f32.mrb[14].mxu0  ;;  %v3175_v62 = vld [vmem:[%s3944_s3 + $0x30] sm:$0xff]  }
 0x100   : > { %v499_v3 = vadd.f32 %v3339_v22, %v498_v2  ;;  %v2886_v4 = vpop.f32.mrb[15].mxu0  ;;  %v714_v5 = vrot.slane %v712_v63, 1  ;;  %v3359_v7 = vsel %vm936_vm2, %v938_v49, %v940_v1  ;;  %v627_v8 = vmax.f32 %v496_v61, 0.0  ;;  %3079 = vmatprep.subr.bf16.mxu1 %v3175_v62  ;;  %2947 = vmatprep.subr.bf16.mxu0 %v3175_v62 }
 0x101   : > { %3085 = vmatpush3.bf16.msra.mxu1 %v3175_v62  ;;  %2948 = vmatpush3.bf16.msra.mxu0 %v3175_v62 }
 0x102   : > { %v628_v9 = vmax.f32 %v499_v3, 0.0  ;;  %v3362_v10 = vsel %vm695_vm3, %v710_v6, %v714_v5  ;;  %v718_v21 = vor.u32 %v716_v15, %v714_v5 }
 0x104   : > { %v661_v11 = vpack.c.bf16 %v628_v9, %v627_v8  ;;  %v3176_v8 = vld [vmem:[%s3944_s3 + $0x38] sm:$0xff]  }
 0x105   : > { %v503_v12 = vpop.f32.mrb[16].mxu0  ;;  %3080 = vmatprep.subr.bf16.mxu1 %v3176_v8  ;;  %2949 = vmatprep.subr.bf16.mxu0 %v3176_v8 }
 0x106   : > { %679 = vst.msk [vmem:[#allocation2 + $0x18] sm:$0xff] %vm379_vm1, %v661_v11  ;;  %v504_v13 = vadd.f32 %v3339_v22, %v503_v12  ;;  %v2889_v14 = vpop.f32.mrb[17].mxu0  ;;  %v720_v16 = vshll.u32 %v661_v11, 16  ;;  %v942_v17 = vrot.slane %v661_v11, 1  ;;  %v724_v33 = vshrl.u32 %v661_v11, 16  ;;  %3086 = vmatpush3.bf16.msra.mxu1 %v3176_v8  ;;  %2950 = vmatpush3.bf16.msra.mxu0 %v3176_v8 }
 0x107   : > { %v506_v18 = vpop.f32.mrb[18].mxu0 }
 0x108   : > { %v507_v19 = vadd.f32 %v3339_v22, %v506_v18  ;;  %v2890_v20 = vpop.f32.mrb[19].mxu0  ;;  %v722_v23 = vrot.slane %v720_v16, 1  ;;  %v3368_v24 = vsel %vm936_vm2, %v940_v1, %v942_v17  ;;  %v629_v25 = vmax.f32 %v504_v13, 0.0 }
 0x109   : > { %v3177_v20 = vld [vmem:[%s3944_s3 + $0x40] sm:$0xff]  }
 0x10a   : > { %v630_v26 = vmax.f32 %v507_v19, 0.0  ;;  %v3371_v27 = vsel %vm695_vm3, %v718_v21, %v722_v23  ;;  %v726_v39 = vor.u32 %v724_v33, %v722_v23  ;;  %3081 = vmatprep.subr.bf16.mxu1 %v3177_v20  ;;  %2951 = vmatprep.subr.bf16.mxu0 %v3177_v20 }
 0x10b   : > { %3087 = vmatpush3.bf16.msra.mxu1 %v3177_v20  ;;  %2952 = vmatpush3.bf16.msra.mxu0 %v3177_v20 }
 0x10c   : > { %v662_v28 = vpack.c.bf16 %v630_v26, %v629_v25 }
 0x10d   : > { %v511_v29 = vpop.f32.mrb[20].mxu0 }
 0x10e   : > { %680 = vst.msk [vmem:[#allocation2 + $0x20] sm:$0xff] %vm379_vm1, %v662_v28  ;;  %v512_v30 = vadd.f32 %v3339_v22, %v511_v29  ;;  %v2893_v31 = vpop.f32.mrb[21].mxu0  ;;  %v728_v32 = vshll.u32 %v662_v28, 16  ;;  %v944_v34 = vrot.slane %v662_v28, 1  ;;  %v732_v48 = vshrl.u32 %v662_v28, 16 }
 0x10f   : > { %v514_v35 = vpop.f32.mrb[22].mxu0 }
 0x110   : > { %v515_v36 = vadd.f32 %v3339_v22, %v514_v35  ;;  %v2894_v37 = vpop.f32.mrb[23].mxu0  ;;  %v730_v38 = vrot.slane %v728_v32, 1  ;;  %v3377_v40 = vsel %vm936_vm2, %v942_v17, %v944_v34  ;;  %v631_v41 = vmax.f32 %v512_v30, 0.0  ;;  %v3178_v30 = vld [vmem:[%s3944_s3 + $0x48] sm:$0xff]  }
 0x111   : > { %3082 = vmatprep.subr.bf16.mxu1 %v3178_v30  ;;  %2953 = vmatprep.subr.bf16.mxu0 %v3178_v30 }
 0x112   : > { %v632_v42 = vmax.f32 %v515_v36, 0.0  ;;  %v3380_v43 = vsel %vm695_vm3, %v726_v39, %v730_v38  ;;  %v734_v54 = vor.u32 %v732_v48, %v730_v38  ;;  %3088 = vmatpush3.bf16.msra.mxu1 %v3178_v30  ;;  %2954 = vmatpush3.bf16.msra.mxu0 %v3178_v30 }
 0x114   : > { %v663_v44 = vpack.c.bf16 %v632_v42, %v631_v41  ;;  %v3179_v42 = vld [vmem:[%s3944_s3 + $0x50] sm:$0xff]  }
 0x115   : > { %v519_v45 = vpop.f32.mrb[24].mxu0  ;;  %3083 = vmatprep.subr.bf16.mxu1 %v3179_v42  ;;  %2955 = vmatprep.subr.bf16.mxu0 %v3179_v42 }
 0x116   : > { %681 = vst.msk [vmem:[#allocation2 + $0x28] sm:$0xff] %vm379_vm1, %v663_v44  ;;  %v520_v46 = vadd.f32 %v3339_v22, %v519_v45  ;;  %v2897_v47 = vpop.f32.mrb[25].mxu0  ;;  %v736_v49 = vshll.u32 %v663_v44, 16  ;;  %v946_v50 = vrot.slane %v663_v44, 1  ;;  %v740_v4 = vshrl.u32 %v663_v44, 16  ;;  %3089 = vmatpush3.bf16.msra.mxu1 %v3179_v42  ;;  %2956 = vmatpush3.bf16.msra.mxu0 %v3179_v42 }
 0x117   : > { %v522_v51 = vpop.f32.mrb[26].mxu0 }
 0x118   : > { %v523_v52 = vadd.f32 %v3339_v22, %v522_v51  ;;  %v2898_v53 = vpop.f32.mrb[27].mxu0  ;;  %v738_v56 = vrot.slane %v736_v49, 1  ;;  %v3386_v57 = vsel %vm936_vm2, %v944_v34, %v946_v50  ;;  %v633_v59 = vmax.f32 %v520_v46, 0.0 }
 0x11a   : > { %v634_v60 = vmax.f32 %v523_v52, 0.0  ;;  %v3389_v61 = vsel %vm695_vm3, %v734_v54, %v738_v56  ;;  %v742_v13 = vor.u32 %v740_v4, %v738_v56 }
 0x11c   : > { %v664_v63 = vpack.c.bf16 %v634_v60, %v633_v59 }
 0x11d   : > { %v527_v0 = vpop.f32.mrb[28].mxu0 }
 0x11e   : > { %682 = vst.msk [vmem:[#allocation2 + $0x30] sm:$0xff] %vm379_vm1, %v664_v63  ;;  %v528_v1 = vadd.f32 %v3339_v22, %v527_v0  ;;  %v2901_v2 = vpop.f32.mrb[29].mxu0  ;;  %v744_v3 = vshll.u32 %v664_v63, 16  ;;  %v948_v5 = vrot.slane %v664_v63, 1  ;;  %v748_v28 = vshrl.u32 %v664_v63, 16 }
 0x11f   : > { %v530_v6 = vpop.f32.mrb[30].mxu0 }
 0x120   : > { %v531_v9 = vadd.f32 %v3339_v22, %v530_v6  ;;  %v2902_v11 = vpop.f32.mrb[31].mxu0  ;;  %v746_v12 = vrot.slane %v744_v3, 1  ;;  %v3401_v14 = vsel %vm936_vm2, %v946_v50, %v948_v5  ;;  %v635_v15 = vmax.f32 %v528_v1, 0.0  ;;  %v3180_v50 = vld [vmem:[%s3944_s3 + $0x58] sm:$0xff]  }
 0x121   : > { %3084 = vmatprep.subr.bf16.mxu1 %v3180_v50  ;;  %2957 = vmatprep.subr.bf16.mxu0 %v3180_v50 }
 0x122   : > { %v636_v16 = vmax.f32 %v531_v9, 0.0  ;;  %v3404_v17 = vsel %vm695_vm3, %v742_v13, %v746_v12  ;;  %v750_v34 = vor.u32 %v748_v28, %v746_v12  ;;  %3090 = vmatpush3.bf16.msra.mxu1 %v3180_v50  ;;  %2958 = vmatpush3.bf16.msra.mxu0 %v3180_v50 }
 0x124   : > { %v665_v18 = vpack.c.bf16 %v636_v16, %v635_v15 }
 0x125   : > { %v535_v19 = vpop.f32.mrb[32].mxu0 }
 0x126   : > { %683 = vst.msk [vmem:[#allocation2 + $0x38] sm:$0xff] %vm379_vm1, %v665_v18  ;;  %v536_v21 = vadd.f32 %v3339_v22, %v535_v19  ;;  %v2905_v23 = vpop.f32.mrb[33].mxu0  ;;  %v950_v25 = vrot.slane %v665_v18, 1  ;;  %v752_v26 = vshll.u32 %v665_v18, 16  ;;  %v756_v47 = vshrl.u32 %v665_v18, 16 }
 0x127   : > { %v538_v29 = vpop.f32.mrb[34].mxu0 }
 0x128   : > { %v539_v31 = vadd.f32 %v3339_v22, %v538_v29  ;;  %v2906_v32 = vpop.f32.mrb[35].mxu0  ;;  %v754_v33 = vrot.slane %v752_v26, 1  ;;  %v3416_v35 = vsel %vm936_vm2, %v948_v5, %v950_v25  ;;  %v637_v36 = vmax.f32 %v536_v21, 0.0 }
 0x12a   : > { %v638_v37 = vmax.f32 %v539_v31, 0.0  ;;  %v3419_v38 = vsel %vm695_vm3, %v750_v34, %v754_v33  ;;  %v758_v54 = vor.u32 %v756_v47, %v754_v33 }
 0x12c   : > { %v666_v39 = vpack.c.bf16 %v638_v37, %v637_v36 }
 0x12d   : > { %v543_v41 = vpop.f32.mrb[36].mxu0 }
 0x12e   : > { %684 = vst.msk [vmem:[#allocation2 + $0x40] sm:$0xff] %vm379_vm1, %v666_v39  ;;  %v544_v44 = vadd.f32 %v3339_v22, %v543_v41  ;;  %v2909_v45 = vpop.f32.mrb[37].mxu0  ;;  %v952_v46 = vrot.slane %v666_v39, 1  ;;  %v760_v48 = vshll.u32 %v666_v39, 16  ;;  %v764_v4 = vshrl.u32 %v666_v39, 16 }
 0x12f   : > { %v546_v49 = vpop.f32.mrb[38].mxu0 }
 0x130   : > { %v547_v51 = vadd.f32 %v3339_v22, %v546_v49  ;;  %v2910_v52 = vpop.f32.mrb[39].mxu0  ;;  %v953_v53 = vsel %vm936_vm2, %v950_v25, %v952_v46  ;;  %v762_v56 = vrot.slane %v760_v48, 1  ;;  %v639_v59 = vmax.f32 %v544_v44, 0.0 }
 0x131   : > { %988 = vrot.lane.b32.xlu1 %v953_v53, %s3203_s17 }
 0x132   : > { %v640_v60 = vmax.f32 %v547_v51, 0.0  ;;  %v763_v62 = vsel %vm695_vm3, %v758_v54, %v762_v56  ;;  %v766_v12 = vor.u32 %v764_v4, %v762_v56 }
 0x133   : > { %858 = vrot.lane.b32.xlu0 %v763_v62, %s3204_s20 }
 0x134   : > { %v667_v63 = vpack.c.bf16 %v640_v60, %v639_v59 }
 0x135   : > { %v551_v0 = vpop.f32.mrb[40].mxu0 }
 0x136   : > { %685 = vst.msk [vmem:[#allocation2 + $0x48] sm:$0xff] %vm379_vm1, %v667_v63  ;;  %v552_v1 = vadd.f32 %v3339_v22, %v551_v0  ;;  %v2913_v2 = vpop.f32.mrb[41].mxu0  ;;  %v954_v3 = vrot.slane %v667_v63, 1  ;;  %v768_v5 = vshll.u32 %v667_v63, 16  ;;  %v772_v25 = vshrl.u32 %v667_v63, 16 }
 0x137   : > { %v554_v6 = vpop.f32.mrb[42].mxu0 }
 0x138   : > { %v555_v8 = vadd.f32 %v3339_v22, %v554_v6  ;;  %v2914_v9 = vpop.f32.mrb[43].mxu0  ;;  %v955_v11 = vsel %vm936_vm2, %v952_v46, %v954_v3  ;;  %v770_v13 = vrot.slane %v768_v5, 1  ;;  %v641_v15 = vmax.f32 %v552_v1, 0.0 }
 0x139   : > { %990 = vrot.lane.b32.xlu1 %v955_v11, %s3203_s17 }
 0x13a   : > { %v642_v16 = vmax.f32 %v555_v8, 0.0  ;;  %v771_v18 = vsel %vm695_vm3, %v766_v12, %v770_v13  ;;  %v774_v32 = vor.u32 %v772_v25, %v770_v13 }
 0x13b   : > { %860 = vrot.lane.b32.xlu0 %v771_v18, %s3204_s20 }
 0x13c   : > { %v668_v19 = vpack.c.bf16 %v642_v16, %v641_v15 }
 0x13d   : > { %v559_v20 = vpop.f32.mrb[44].mxu0 }
 0x13e   : > { %686 = vst.msk [vmem:[#allocation2 + $0x50] sm:$0xff] %vm379_vm1, %v668_v19  ;;  %v560_v21 = vadd.f32 %v3339_v22, %v559_v20  ;;  %v2917_v23 = vpop.f32.mrb[45].mxu0  ;;  %v776_v26 = vshll.u32 %v668_v19, 16  ;;  %v956_v28 = vrot.slane %v668_v19, 1  ;;  %v780_v46 = vshrl.u32 %v668_v19, 16 }
 0x13f   : > { %v562_v29 = vpop.f32.mrb[46].mxu0 }
 0x140   : > { %v563_v30 = vadd.f32 %v3339_v22, %v562_v29  ;;  %v2918_v31 = vpop.f32.mrb[47].mxu0  ;;  %v778_v33 = vrot.slane %v776_v26, 1  ;;  %v957_v34 = vsel %vm936_vm2, %v954_v3, %v956_v28  ;;  %v643_v36 = vmax.f32 %v560_v21, 0.0 }
 0x142   : > { %v644_v37 = vmax.f32 %v563_v30, 0.0  ;;  %v779_v39 = vsel %vm695_vm3, %v774_v32, %v778_v33  ;;  %v782_v52 = vor.u32 %v780_v46, %v778_v33 }
 0x143   : > { %862 = vrot.lane.b32.xlu0 %v779_v39, %s3204_s20 }
 0x144   : > { %v669_v41 = vpack.c.bf16 %v644_v37, %v643_v36 }
 0x145   : > { %v567_v42 = vpop.f32.mrb[48].mxu0 }
 0x146   : > { %687 = vst.msk [vmem:[#allocation2 + $0x58] sm:$0xff] %vm379_vm1, %v669_v41  ;;  %v568_v44 = vadd.f32 %v3339_v22, %v567_v42  ;;  %v2921_v45 = vpop.f32.mrb[49].mxu0  ;;  %v784_v47 = vshll.u32 %v669_v41, 16  ;;  %v958_v48 = vrot.slane %v669_v41, 1  ;;  %v788_v2 = vshrl.u32 %v669_v41, 16 }
 0x147   : > { %992 = vrot.lane.b32.xlu0 %v957_v34, %s3203_s17  ;;  %v570_v49 = vpop.f32.mrb[50].mxu0 }
 0x148   : > { %v571_v50 = vadd.f32 %v3339_v22, %v570_v49  ;;  %v2922_v51 = vpop.f32.mrb[51].mxu0  ;;  %v786_v53 = vrot.slane %v784_v47, 1  ;;  %v959_v54 = vsel %vm936_vm2, %v956_v28, %v958_v48  ;;  %v645_v56 = vmax.f32 %v568_v44, 0.0  ;;  %v3466_v28 = vld [vmem:[%s3944_s3] sm:$0xff]  }
 0x149   : > { %2991 = vmatprep.subr.bf16.mxu1 %v3466_v28 }
 0x14a   : > { %v646_v59 = vmax.f32 %v571_v50, 0.0  ;;  %v787_v60 = vsel %vm695_vm3, %v782_v52, %v786_v53  ;;  %v790_v9 = vor.u32 %v788_v2, %v786_v53 }
 0x14b   : > { %864 = vrot.lane.b32.xlu1 %v787_v60, %s3204_s20 }
 0x14c   : > { %v670_v62 = vpack.c.bf16 %v646_v59, %v645_v56 }
 0x14d   : > { %v575_v63 = vpop.f32.mrb[52].mxu0 }
 0x14e   : > { %688 = vst.msk [vmem:[#allocation2 + $0x60] sm:$0xff] %vm379_vm1, %v670_v62  ;;  %v576_v0 = vadd.f32 %v3339_v22, %v575_v63  ;;  %v2925_v1 = vpop.f32.mrb[53].mxu0  ;;  %v792_v3 = vshll.u32 %v670_v62, 16  ;;  %v960_v4 = vrot.slane %v670_v62, 1  ;;  %v796_v23 = vshrl.u32 %v670_v62, 16 }
 0x14f   : > { %994 = vrot.lane.b32.xlu1 %v959_v54, %s3203_s17  ;;  %v578_v5 = vpop.f32.mrb[54].mxu0 }
 0x150   : > { %v579_v6 = vadd.f32 %v3339_v22, %v578_v5  ;;  %v2926_v8 = vpop.f32.mrb[55].mxu0  ;;  %v794_v11 = vrot.slane %v792_v3, 1  ;;  %v961_v12 = vsel %vm936_vm2, %v958_v48, %v960_v4  ;;  %v647_v13 = vmax.f32 %v576_v0, 0.0 }
 0x152   : > { %v648_v15 = vmax.f32 %v579_v6, 0.0  ;;  %v795_v16 = vsel %vm695_vm3, %v790_v9, %v794_v11  ;;  %v798_v32 = vor.u32 %v796_v23, %v794_v11 }
 0x153   : > { %866 = vrot.lane.b32.xlu0 %v795_v16, %s3204_s20 }
 0x154   : > { %v671_v18 = vpack.c.bf16 %v648_v15, %v647_v13 }
 0x155   : > { %v583_v19 = vpop.f32.mrb[56].mxu0 }
 0x156   : > { %689 = vst.msk [vmem:[#allocation2 + $0x68] sm:$0xff] %vm379_vm1, %v671_v18  ;;  %v584_v20 = vadd.f32 %v3339_v22, %v583_v19  ;;  %v2929_v21 = vpop.f32.mrb[57].mxu0  ;;  %v800_v25 = vshll.u32 %v671_v18, 16  ;;  %v962_v26 = vrot.slane %v671_v18, 1  ;;  %v804_v46 = vshrl.u32 %v671_v18, 16 }
 0x157   : > { %996 = vrot.lane.b32.xlu0 %v961_v12, %s3203_s17  ;;  %v586_v29 = vpop.f32.mrb[58].mxu0 }
 0x158   : > { %v587_v30 = vadd.f32 %v3339_v22, %v586_v29  ;;  %v2930_v31 = vpop.f32.mrb[59].mxu0  ;;  %v802_v33 = vrot.slane %v800_v25, 1  ;;  %v963_v34 = vsel %vm936_vm2, %v960_v4, %v962_v26  ;;  %v649_v36 = vmax.f32 %v584_v20, 0.0 }
 0x15a   : > { %v650_v37 = vmax.f32 %v587_v30, 0.0  ;;  %v803_v39 = vsel %vm695_vm3, %v798_v32, %v802_v33  ;;  %v806_v52 = vor.u32 %v804_v46, %v802_v33 }
 0x15b   : > { %868 = vrot.lane.b32.xlu1 %v803_v39, %s3204_s20 }
 0x15c   : > { %v672_v41 = vpack.c.bf16 %v650_v37, %v649_v36 }
 0x15d   : > { %v591_v42 = vpop.f32.mrb[60].mxu0 }
 0x15e   : > { %690 = vst.msk [vmem:[#allocation2 + $0x70] sm:$0xff] %vm379_vm1, %v672_v41  ;;  %v592_v44 = vadd.f32 %v3339_v22, %v591_v42  ;;  %v2933_v45 = vpop.f32.mrb[61].mxu0  ;;  %v808_v47 = vshll.u32 %v672_v41, 16  ;;  %v964_v48 = vrot.slane %v672_v41, 1  ;;  %v812_v2 = vshrl.u32 %v672_v41, 16 }
 0x15f   : > { %998 = vrot.lane.b32.xlu1 %v963_v34, %s3203_s17  ;;  %v594_v49 = vpop.f32.mrb[62].mxu0 }
 0x160   : > { %v595_v50 = vadd.f32 %v3339_v22, %v594_v49  ;;  %v2934_v51 = vpop.f32.mrb[63].mxu0  ;;  %v810_v53 = vrot.slane %v808_v47, 1  ;;  %v965_v54 = vsel %vm936_vm2, %v962_v26, %v964_v48  ;;  %v651_v56 = vmax.f32 %v592_v44, 0.0 }
 0x162   : > { %v652_v59 = vmax.f32 %v595_v50, 0.0  ;;  %v811_v60 = vsel %vm695_vm3, %v806_v52, %v810_v53  ;;  %v814_v9 = vor.u32 %v812_v2, %v810_v53 }
 0x163   : > { %870 = vrot.lane.b32.xlu0 %v811_v60, %s3204_s20 }
 0x164   : > { %v673_v62 = vpack.c.bf16 %v652_v59, %v651_v56 }
 0x165   : > { %v599_v63 = vpop.f32.mrb[64].mxu0 }
 0x166   : > { %691 = vst.msk [vmem:[#allocation2 + $0x78] sm:$0xff] %vm379_vm1, %v673_v62  ;;  %v600_v0 = vadd.f32 %v3339_v22, %v599_v63  ;;  %v2937_v1 = vpop.f32.mrb[65].mxu0  ;;  %v816_v3 = vshll.u32 %v673_v62, 16  ;;  %v966_v4 = vrot.slane %v673_v62, 1  ;;  %v820_v23 = vshrl.u32 %v673_v62, 16 }
 0x167   : > { %1000 = vrot.lane.b32.xlu0 %v965_v54, %s3203_s17  ;;  %v602_v5 = vpop.f32.mrb[66].mxu0 }
 0x168   : > { %v603_v6 = vadd.f32 %v3339_v22, %v602_v5  ;;  %v2938_v8 = vpop.f32.mrb[67].mxu0  ;;  %v818_v11 = vrot.slane %v816_v3, 1  ;;  %v967_v12 = vsel %vm936_vm2, %v964_v48, %v966_v4  ;;  %v653_v13 = vmax.f32 %v600_v0, 0.0 }
 0x169   : > { %v3576_v8 = vld [vmem:[%s3944_s3 + $0x60] sm:$0xff]  }
 0x16a   : > { %v654_v15 = vmax.f32 %v603_v6, 0.0  ;;  %v819_v16 = vsel %vm695_vm3, %v814_v9, %v818_v11  ;;  %v822_v32 = vor.u32 %v820_v23, %v818_v11 }
 0x16b   : > { %872 = vrot.lane.b32.xlu1 %v819_v16, %s3204_s20 }
 0x16c   : > { %v674_v18 = vpack.c.bf16 %v654_v15, %v653_v13 }
 0x16d   : > { %v607_v19 = vpop.f32.mrb[68].mxu0 }
 0x16e   : > { %692 = vst.msk [vmem:[#allocation2 + $0x80] sm:$0xff] %vm379_vm1, %v674_v18  ;;  %v608_v20 = vadd.f32 %v3339_v22, %v607_v19  ;;  %v2941_v21 = vpop.f32.mrb[69].mxu0  ;;  %v824_v25 = vshll.u32 %v674_v18, 16  ;;  %v968_v26 = vrot.slane %v674_v18, 1  ;;  %v828_v45 = vshrl.u32 %v674_v18, 16 }
 0x16f   : > { %1002 = vrot.lane.b32.xlu1 %v967_v12, %s3203_s17  ;;  %v610_v29 = vpop.f32.mrb[70].mxu0 }
 0x170   : > { %v611_v30 = vadd.f32 %v3339_v22, %v610_v29  ;;  %v2942_v31 = vpop.f32.mrb[71].mxu0  ;;  %v826_v33 = vrot.slane %v824_v25, 1  ;;  %v969_v34 = vsel %vm936_vm2, %v966_v4, %v968_v26  ;;  %v655_v36 = vmax.f32 %v608_v20, 0.0  ;;  %v3186_v4 = vld [vmem:[%s3944_s3 + $0x28] sm:$0xff]  }
 0x172   : > { %v656_v37 = vmax.f32 %v611_v30, 0.0  ;;  %v827_v39 = vsel %vm695_vm3, %v822_v32, %v826_v33  ;;  %v830_v51 = vor.u32 %v828_v45, %v826_v33  ;;  %v3188_v45 = vld [vmem:[%s3944_s3 + $0x68] sm:$0xff]  }
 0x173   : > { %874 = vrot.lane.b32.xlu0 %v827_v39, %s3204_s20 }
 0x174   : > { %v675_v41 = vpack.c.bf16 %v656_v37, %v655_v36 }
 0x175   : > { %v615_v42 = vpop.f32.mrb[72].mxu0 }
 0x176   : > { %693 = vst.msk [vmem:[#allocation2 + $0x88] sm:$0xff] %vm379_vm1, %v675_v41  ;;  %v616_v44 = vadd.f32 %v3339_v22, %v615_v42  ;;  %v832_v46 = vshll.u32 %v675_v41, 16  ;;  %v970_v47 = vrot.slane %v675_v41, 1  ;;  %v2945_v48 = vpop.f32.mrb[73].mxu0  ;;  %v836_v62 = vshrl.u32 %v675_v41, 16 }
 0x177   : > { %1004 = vrot.lane.b32.xlu0 %v969_v34, %s3203_s17  ;;  %v618_v49 = vpop.f32.mrb[74].mxu0 }
 0x178   : > { %v657_v50 = vmax.f32 %v616_v44, 0.0  ;;  %v834_v52 = vrot.slane %v832_v46, 1  ;;  %v971_v53 = vsel %vm936_vm2, %v968_v26, %v970_v47  ;;  %v2946_v54 = vpop.f32.mrb[75].mxu0 }
 0x17a   : > { %v694_v56 = vpack.c.bf16 %v657_v50, %v657_v50  ;;  %v835_v59 = vsel %vm695_vm3, %v830_v51, %v834_v52  ;;  %v838_v0 = vor.u32 %v836_v62, %v834_v52  ;;  %v3189_v50 = vld [vmem:[%s3944_s3 + $0x70] sm:$0xff]   ;;  %v3191_v62 = vld [vmem:[%s3944_s3 + $0x80] sm:$0xff]  }
 0x17b   : > { %844 = vrot.lane.b32.xlu0 %v3353_v58, %s3204_s20  ;;  %876 = vrot.lane.b32.xlu1 %v835_v59, %s3204_s20 }
 0x17c   : > { %v840_v22 = vshll.u32 %v694_v56, 16  ;;  %v972_v60 = vrot.slane %v694_v56, 1 }
 0x17e   : > { %v842_v63 = vrot.slane %v840_v22, 1  ;;  %v973_v1 = vsel %vm936_vm2, %v970_v47, %v972_v60  ;;  %v3190_v22 = vld [vmem:[%s3944_s3 + $0x78] sm:$0xff]  }
 0x17f   : > { %974 = vrot.lane.b32.xlu0 %v3350_v55, %s3203_s17  ;;  %1006 = vrot.lane.b32.xlu1 %v971_v53, %s3203_s17 }
 0x180   : > { %v843_v2 = vsel %vm695_vm3, %v838_v0, %v842_v63 }
 0x183   : > { %848 = vrot.lane.b32.xlu0 %v3371_v27, %s3204_s20  ;;  %846 = vrot.lane.b32.xlu1 %v3362_v10, %s3204_s20 }
 0x187   : > { %978 = vrot.lane.b32.xlu0 %v3368_v24, %s3203_s17  ;;  %976 = vrot.lane.b32.xlu1 %v3359_v7, %s3203_s17 }
 0x18b   : > { %852 = vrot.lane.b32.xlu0 %v3389_v61, %s3204_s20  ;;  %850 = vrot.lane.b32.xlu1 %v3380_v43, %s3204_s20  ;;  %v3183_v61 = vld [vmem:[%s3944_s3 + $0x10] sm:$0xff]  }
 0x18f   : > { %982 = vrot.lane.b32.xlu0 %v3386_v57, %s3203_s17  ;;  %980 = vrot.lane.b32.xlu1 %v3377_v40, %s3203_s17  ;;  %v3182_v40 = vld [vmem:[%s3944_s3 + $0x8] sm:$0xff]  }
 0x193   : > { %856 = vrot.lane.b32.xlu0 %v3419_v38, %s3204_s20  ;;  %854 = vrot.lane.b32.xlu1 %v3404_v17, %s3204_s20  ;;  %v3184_v17 = vld [vmem:[%s3944_s3 + $0x18] sm:$0xff]  }
 0x197   : > { %984 = vrot.lane.b32.xlu1 %v3401_v14, %s3203_s17  ;;  %878 = vrot.lane.b32.xlu0 %v843_v2, %s3204_s20 }
 0x19b   : > { %986 = vrot.lane.b32.xlu1 %v3416_v35, %s3203_s17 }
 0x19f   : > { %1008 = vrot.lane.b32.xlu1 %v973_v1, %s3203_s17  ;;  %v3192_v1 = vld [vmem:[%s3944_s3 + $0x88] sm:$0xff]  }
 0x1a3   : > { %v989_v58 = vpop.permute.xlu1 %988 }
 0x1a5   : > { %v859_v55 = vpop.permute.xlu0 %858 }
 0x1a6   : > { %906 = vst.msk [vmem:[#allocation2 + $0x38] sm:$0xff] %vm898_vm4, %v859_v55 }
 0x1a7   : > { %1036 = vst.msk [vmem:[#allocation2 + $0x38] sm:$0xff] %vm1028_vm5, %v989_v58 }
 0x1ab   : > { %v991_v10 = vpop.permute.xlu1 %990 }
 0x1ad   : > { %v861_v7 = vpop.permute.xlu0 %860 }
 0x1ae   : > { %907 = vst.msk [vmem:[#allocation2 + $0x40] sm:$0xff] %vm898_vm4, %v861_v7  ;;  %v3537_v24 = vld [vmem:[#allocation2 + $0x38] sm:$0xff] }
 0x1af   : > { %1037 = vst.msk [vmem:[#allocation2 + $0x40] sm:$0xff] %vm1028_vm5, %v991_v10  ;;  %2971 = vmatprep.mubr.msk.bf16.mxu1 %vm1125_vm6, %v3537_v24 }
 0x1b5   : > { %v863_v27 = vpop.permute.xlu0 %862 }
 0x1b6   : > { %908 = vst.msk [vmem:[#allocation2 + $0x48] sm:$0xff] %vm898_vm4, %v863_v27  ;;  %v3546_v43 = vld [vmem:[#allocation2 + $0x40] sm:$0xff] }
 0x1b7   : > { %2972 = vmatmul.mubr.msk.bf16.vlgmr.msra.gmra.mrb[0].mxu1 %vm1125_vm6, %v3546_v43 }
 0x1b8   : > { %2992 = vmatpush3.bf16.msra.mxu1 %v3466_v28  ;;  %v3185_v28 = vld [vmem:[%s3944_s3 + $0x20] sm:$0xff]  }
 0x1b9   : > { %v993_v57 = vpop.permute.xlu0 %992  ;;  %2993 = vmatprep.subr.bf16.mxu1 %v3182_v40 }
 0x1ba   : > { %1038 = vst.msk [vmem:[#allocation2 + $0x48] sm:$0xff] %vm1028_vm5, %v993_v57 }
 0x1bc   : > { %2994 = vmatpush3.bf16.msra.mxu1 %v3182_v40 }
 0x1bd   : > { %v865_v14 = vpop.permute.xlu1 %864  ;;  %2995 = vmatprep.subr.bf16.mxu1 %v3183_v61 }
 0x1be   : > { %909 = vst.msk [vmem:[#allocation2 + $0x50] sm:$0xff] %vm898_vm4, %v865_v14 }
 0x1c0   : > { %2996 = vmatpush3.bf16.msra.mxu1 %v3183_v61 }
 0x1c1   : > { %v995_v35 = vpop.permute.xlu1 %994  ;;  %v3559_v38 = vld [vmem:[#allocation2 + $0x48] sm:$0xff]  ;;  %2997 = vmatprep.subr.bf16.mxu1 %v3184_v17 }
 0x1c2   : > { %1039 = vst.msk [vmem:[#allocation2 + $0x50] sm:$0xff] %vm1028_vm5, %v995_v35  ;;  %2975 = vmatprep.mubr.msk.bf16.mxu1 %vm1125_vm6, %v3559_v38 }
 0x1c4   : > { %2998 = vmatpush3.bf16.msra.mxu1 %v3184_v17 }
 0x1c5   : > { %v867_v3 = vpop.permute.xlu0 %866  ;;  %2999 = vmatprep.subr.bf16.mxu1 %v3185_v28 }
 0x1c6   : > { %910 = vst.msk [vmem:[#allocation2 + $0x58] sm:$0xff] %vm898_vm4, %v867_v3 }
 0x1c8   : > { %3000 = vmatpush3.bf16.msra.mxu1 %v3185_v28 }
 0x1c9   : > { %v997_v5 = vpop.permute.xlu0 %996  ;;  %v3571_v6 = vld [vmem:[#allocation2 + $0x50] sm:$0xff]  ;;  %3001 = vmatprep.subr.bf16.mxu1 %v3186_v4 }
 0x1ca   : > { %1040 = vst.msk [vmem:[#allocation2 + $0x58] sm:$0xff] %vm1028_vm5, %v997_v5  ;;  %2976 = vmatmul.mubr.msk.bf16.gmra.mrb[4].mxu1 %vm1125_vm6, %v3571_v6 }
 0x1cc   : > { %3002 = vmatpush3.bf16.msra.mxu1 %v3186_v4 }
 0x1cd   : > { %v869_v9 = vpop.permute.xlu1 %868  ;;  %3035 = vmatprep.subr.bf16.mxu1 %v3576_v8 }
 0x1ce   : > { %911 = vst.msk [vmem:[#allocation2 + $0x60] sm:$0xff] %vm898_vm4, %v869_v9 }
 0x1d1   : > { %v999_v11 = vpop.permute.xlu1 %998  ;;  %v3583_v12 = vld [vmem:[#allocation2 + $0x58] sm:$0xff] }
 0x1d2   : > { %1041 = vst.msk [vmem:[#allocation2 + $0x60] sm:$0xff] %vm1028_vm5, %v999_v11  ;;  %2979 = vmatprep.mubr.msk.bf16.mxu1 %vm1125_vm6, %v3583_v12 }
 0x1d5   : > { %v871_v13 = vpop.permute.xlu0 %870 }
 0x1d6   : > { %912 = vst.msk [vmem:[#allocation2 + $0x68] sm:$0xff] %vm898_vm4, %v871_v13 }
 0x1d9   : > { %v1001_v15 = vpop.permute.xlu0 %1000  ;;  %v3589_v16 = vld [vmem:[#allocation2 + $0x60] sm:$0xff] }
 0x1da   : > { %1042 = vst.msk [vmem:[#allocation2 + $0x68] sm:$0xff] %vm1028_vm5, %v1001_v15  ;;  %2980 = vmatmul.mubr.msk.bf16.gmra.mrb[8].mxu1 %vm1125_vm6, %v3589_v16 }
 0x1dd   : > { %v873_v18 = vpop.permute.xlu1 %872 }
 0x1de   : > { %913 = vst.msk [vmem:[#allocation2 + $0x70] sm:$0xff] %vm898_vm4, %v873_v18 }
 0x1e1   : > { %v1003_v19 = vpop.permute.xlu1 %1002  ;;  %v3595_v20 = vld [vmem:[#allocation2 + $0x68] sm:$0xff] }
 0x1e2   : > { %1043 = vst.msk [vmem:[#allocation2 + $0x70] sm:$0xff] %vm1028_vm5, %v1003_v19  ;;  %2983 = vmatprep.mubr.msk.bf16.mxu1 %vm1125_vm6, %v3595_v20 }
 0x1e5   : > { %v875_v21 = vpop.permute.xlu0 %874 }
 0x1e6   : > { %914 = vst.msk [vmem:[#allocation2 + $0x78] sm:$0xff] %vm898_vm4, %v875_v21 }
 0x1e9   : > { %v1005_v23 = vpop.permute.xlu0 %1004  ;;  %v3601_v25 = vld [vmem:[#allocation2 + $0x70] sm:$0xff] }
 0x1ea   : > { %1044 = vst.msk [vmem:[#allocation2 + $0x78] sm:$0xff] %vm1028_vm5, %v1005_v23  ;;  %2984 = vmatmul.mubr.msk.bf16.gmra.mrb[12].mxu1 %vm1125_vm6, %v3601_v25  ;;  %v3716_v23 = vld [vmem:[%s3945_s4] ss:$0 sm:$0xff] }
 0x1ed   : > { %v845_v26 = vpop.permute.xlu0 %844  ;;  %v877_v29 = vpop.permute.xlu1 %876 }
 0x1ee   : > { %899 = vst.msk [vmem:[#allocation2] sm:$0xff] %vm898_vm4, %v845_v26  ;;  %915 = vst.msk [vmem:[#allocation2 + $0x80] sm:$0xff] %vm898_vm4, %v877_v29 }
 0x1f1   : > { %v975_v30 = vpop.permute.xlu0 %974  ;;  %v1007_v31 = vpop.permute.xlu1 %1006  ;;  %v3608_v32 = vld [vmem:[#allocation2 + $0x78] sm:$0xff] }
 0x1f2   : > { %1029 = vst.msk [vmem:[#allocation2] sm:$0xff] %vm1028_vm5, %v975_v30  ;;  %1045 = vst.msk [vmem:[#allocation2 + $0x80] sm:$0xff] %vm1028_vm5, %v1007_v31  ;;  %2987 = vmatprep.mubr.msk.bf16.mxu1 %vm1125_vm6, %v3608_v32 }
 0x1f5   : > { %v849_v33 = vpop.permute.xlu0 %848  ;;  %v847_v34 = vpop.permute.xlu1 %846 }
 0x1f6   : > { %901 = vst.msk [vmem:[#allocation2 + $0x10] sm:$0xff] %vm898_vm4, %v849_v33  ;;  %900 = vst.msk [vmem:[#allocation2 + $0x8] sm:$0xff] %vm898_vm4, %v847_v34 }
 0x1f9   : > { %v979_v36 = vpop.permute.xlu0 %978  ;;  %v977_v37 = vpop.permute.xlu1 %976  ;;  %v3616_v39 = vld [vmem:[#allocation2 + $0x80] sm:$0xff] }
 0x1fa   : > { %v1047_v41 = vld [vmem:[#allocation2] sm:$0xff]  ;;  %1031 = vst.msk [vmem:[#allocation2 + $0x10] sm:$0xff] %vm1028_vm5, %v979_v36  ;;  %1030 = vst.msk [vmem:[#allocation2 + $0x8] sm:$0xff] %vm1028_vm5, %v977_v37  ;;  %2988 = vmatmul.mubr.msk.bf16.gmra.mrb[16].mxu1 %vm1125_vm6, %v3616_v39 }
 0x1fb   : > { %3003 = vmatprep.mubr.msk.bf16.mxu1 %vm1125_vm6, %v1047_v41  ;;  %v3205_v41 = vmov 1966171168  }
 0x1fd   : > { %v853_v42 = vpop.permute.xlu0 %852  ;;  %v851_v44 = vpop.permute.xlu1 %850 }
 0x1fe   : > { %903 = vst.msk [vmem:[#allocation2 + $0x20] sm:$0xff] %vm898_vm4, %v853_v42  ;;  %902 = vst.msk [vmem:[#allocation2 + $0x18] sm:$0xff] %vm898_vm4, %v851_v44  ;;  %v1981_v42 = vunpack.c.l.s4 %v3205_v41  ;;  %v1983_v44 = vlaneseq }
 0x201   : > { %v983_v46 = vpop.permute.xlu0 %982  ;;  %v981_v47 = vpop.permute.xlu1 %980  ;;  %v1048_v48 = vld [vmem:[#allocation2 + $0x8] sm:$0xff]  ;;  %v1049_v49 = vld [vmem:[#allocation2 + $0x10] sm:$0xff] }
 0x202   : > { %1033 = vst.msk [vmem:[#allocation2 + $0x20] sm:$0xff] %vm1028_vm5, %v983_v46  ;;  %1032 = vst.msk [vmem:[#allocation2 + $0x18] sm:$0xff] %vm1028_vm5, %v981_v47  ;;  %2959 = vmatprep.mubr.msk.bf16.mxu0 %vm1125_vm6, %v1048_v48  ;;  %3004 = vmatmul.mubr.msk.bf16.vlgmr.msra.gmra.mrb[20].mxu1 %vm1125_vm6, %v1048_v48 }
 0x203   : > { %3036 = vmatpush3.bf16.msra.mxu1 %v3576_v8  ;;  %2960 = vmatmul.mubr.msk.bf16.vlgmr.msra.gmra.mrb[76].mxu0 %vm1125_vm6, %v1049_v49 }
 0x204   : > { %3007 = vmatprep.mubr.msk.bf16.mxu1 %vm1125_vm6, %v1049_v49  ;;  %3037 = vmatprep.subr.bf16.mxu1 %v3188_v45 }
 0x205   : > { %v857_v51 = vpop.permute.xlu0 %856  ;;  %v855_v52 = vpop.permute.xlu1 %854 }
 0x206   : > { %905 = vst.msk [vmem:[#allocation2 + $0x30] sm:$0xff] %vm898_vm4, %v857_v51  ;;  %904 = vst.msk [vmem:[#allocation2 + $0x28] sm:$0xff] %vm898_vm4, %v855_v52  ;;  %v1982_v51 = vunpack.c.0.s8 %v1981_v42  ;;  %v1984_v52 = vshrl.u32 %v1983_v44, 7 }
 0x207   : > { %3038 = vmatpush3.bf16.msra.mxu1 %v3188_v45 }
 0x208   : > { %3039 = vmatprep.subr.bf16.mxu1 %v3189_v50 }
 0x209   : > { %v985_v53 = vpop.permute.xlu1 %984  ;;  %v879_v54 = vpop.permute.xlu0 %878  ;;  %v1050_v56 = vld [vmem:[#allocation2 + $0x18] sm:$0xff]  ;;  %v1051_v59 = vld [vmem:[#allocation2 + $0x20] sm:$0xff] }
 0x20a   : > { %1034 = vst.msk [vmem:[#allocation2 + $0x28] sm:$0xff] %vm1028_vm5, %v985_v53  ;;  %2963 = vmatprep.mubr.msk.bf16.mxu0 %vm1125_vm6, %v1050_v56  ;;  %3008 = vmatmul.mubr.msk.bf16.gmra.mrb[24].mxu1 %vm1125_vm6, %v1050_v56 }
 0x20b   : > { %916 = vst.msk [vmem:[#allocation2 + $0x88] sm:$0xff] %vm898_vm4, %v879_v54  ;;  %2964 = vmatmul.mubr.msk.bf16.gmra.mrb[80].mxu0 %vm1125_vm6, %v1051_v59  ;;  %3011 = vmatprep.mubr.msk.bf16.mxu1 %vm1125_vm6, %v1051_v59 }
 0x20c   : > { %3040 = vmatpush3.bf16.msra.mxu1 %v3189_v50 }
 0x20d   : > { %v987_v60 = vpop.permute.xlu1 %986  ;;  %3041 = vmatprep.subr.bf16.mxu1 %v3190_v22 }
 0x20e   : > { %1035 = vst.msk [vmem:[#allocation2 + $0x30] sm:$0xff] %vm1028_vm5, %v987_v60 }
 0x210   : > { %3042 = vmatpush3.bf16.msra.mxu1 %v3190_v22 }
 0x211   : > { %v1009_v63 = vpop.permute.xlu1 %1008  ;;  %v1052_v0 = vld [vmem:[#allocation2 + $0x28] sm:$0xff]  ;;  %3043 = vmatprep.subr.bf16.mxu1 %v3191_v62 }
 0x212   : > { %1046 = vst.msk [vmem:[#allocation2 + $0x88] sm:$0xff] %vm1028_vm5, %v1009_v63  ;;  %2967 = vmatprep.mubr.msk.bf16.mxu0 %vm1125_vm6, %v1052_v0  ;;  %3012 = vmatmul.mubr.msk.bf16.gmra.mrb[28].mxu1 %vm1125_vm6, %v1052_v0 }
 0x214   : > { %3044 = vmatpush3.bf16.msra.mxu1 %v3191_v62 }
 0x215   : > { %v1053_v2 = vld [vmem:[#allocation2 + $0x30] sm:$0xff]  ;;  %3045 = vmatprep.subr.bf16.mxu1 %v3192_v1 }
 0x216   : > { %2968 = vmatmul.mubr.msk.bf16.gmra.mrb[84].mxu0 %vm1125_vm6, %v1053_v2  ;;  %3015 = vmatprep.mubr.msk.bf16.mxu1 %vm1125_vm6, %v1053_v2 }
 0x218   : > { %3046 = vmatpush3.bf16.msra.mxu1 %v3192_v1 }
 0x219   : > { %v1534_v55 = vld [vmem:[#allocation2 + $0x88] sm:$0xff] }
 0x21a   : > { %3016 = vmatmul.mubr.msk.bf16.gmra.mrb[0].mxu1 %vm1125_vm6, %v3537_v24 }
 0x21b   : > { %3019 = vmatprep.mubr.msk.bf16.mxu1 %vm1125_vm6, %v3546_v43 }
 0x222   : > { %3020 = vmatmul.mubr.msk.bf16.gmra.mrb[4].mxu1 %vm1125_vm6, %v3559_v38 }
 0x223   : > { %3023 = vmatprep.mubr.msk.bf16.mxu1 %vm1125_vm6, %v3571_v6 }
 0x22a   : > { %3024 = vmatmul.mubr.msk.bf16.gmra.mrb[8].mxu1 %vm1125_vm6, %v3583_v12 }
 0x22b   : > { %3027 = vmatprep.mubr.msk.bf16.mxu1 %vm1125_vm6, %v3589_v16 }
 0x232   : > { %3028 = vmatmul.mubr.msk.bf16.gmra.mrb[32].mxu1 %vm1125_vm6, %v3595_v20 }
 0x233   : > { %3031 = vmatprep.mubr.msk.bf16.mxu1 %vm1125_vm6, %v3601_v25 }
 0x23a   : > { %3032 = vmatmul.mubr.msk.bf16.gmra.mrb[36].mxu1 %vm1125_vm6, %v3608_v32 }
 0x23b   : > { %3047 = vmatprep.mubr.msk.bf16.mxu1 %vm1125_vm6, %v1049_v49 }
 0x242   : > { %3048 = vmatmul.mubr.msk.bf16.vlgmr.msra.gmra.mrb[20].mxu1 %vm1125_vm6, %v1050_v56 }
 0x243   : > { %3051 = vmatprep.mubr.msk.bf16.mxu1 %vm1125_vm6, %v1051_v59 }
 0x24a   : > { %3052 = vmatmul.mubr.msk.bf16.gmra.mrb[24].mxu1 %vm1125_vm6, %v1052_v0 }
 0x24b   : > { %3055 = vmatprep.mubr.msk.bf16.mxu1 %vm1125_vm6, %v1053_v2 }
 0x252   : > { %3056 = vmatmul.mubr.msk.bf16.gmra.mrb[28].mxu1 %vm1125_vm6, %v3537_v24 }
 0x253   : > { %3059 = vmatprep.mubr.msk.bf16.mxu1 %vm1125_vm6, %v3546_v43 }
 0x25a   : > { %3060 = vmatmul.mubr.msk.bf16.gmra.mrb[0].mxu1 %vm1125_vm6, %v3559_v38 }
 0x25b   : > { %3063 = vmatprep.mubr.msk.bf16.mxu1 %vm1125_vm6, %v3571_v6 }
 0x262   : > { %3064 = vmatmul.mubr.msk.bf16.gmra.mrb[4].mxu1 %vm1125_vm6, %v3583_v12 }
 0x263   : > { %3067 = vmatprep.mubr.msk.bf16.mxu1 %vm1125_vm6, %v3589_v16 }
 0x26a   : > { %3068 = vmatmul.mubr.msk.bf16.gmra.mrb[8].mxu1 %vm1125_vm6, %v3595_v20 }
 0x26b   : > { %3071 = vmatprep.mubr.msk.bf16.mxu1 %vm1125_vm6, %v3601_v25 }
 0x272   : > { %3072 = vmatmul.mubr.msk.bf16.gmra.mrb[40].mxu1 %vm1125_vm6, %v3608_v32 }
 0x273   : > { %3075 = vmatprep.mubr.msk.bf16.mxu1 %vm1125_vm6, %v3616_v39 }
 0x27a   : > { %3076 = vmatmul.mubr.msk.bf16.gmra.mrb[44].mxu1 %vm1125_vm6, %v1534_v55 }
 0x2bd   : > { %v2985_v58 = vpop.f32.mrb[12].mxu1 }
 0x2be   : > { %v1304_v7 = vpop.f32.mrb[13].mxu1 }
 0x2bf   : > { %v2986_v10 = vpop.f32.mrb[14].mxu1  ;;  %v3724_v7 = vsub.s32 %v1982_v51, %v1984_v52 }
 0x2c0   : > { %v1306_v24 = vpop.f32.mrb[15].mxu1 }
 0x2cd   : > { %v2989_v27 = vpop.f32.mrb[16].mxu1 }
 0x2ce   : > { %v1316_v40 = vpop.f32.mrb[17].mxu1 }
 0x2cf   : > { %v2990_v43 = vpop.f32.mrb[18].mxu1 }
 0x2d0   : > { %v1318_v57 = vpop.f32.mrb[19].mxu1 }
 0x2d6   : > { %v2961_v61 = vpop.f32.mrb[76].mxu0 }
 0x2d7   : > { %v1208_v14 = vpop.f32.mrb[77].mxu0 }
 0x2d8   : > { %v2962_v17 = vpop.f32.mrb[78].mxu0 }
 0x2d9   : > { %v1211_v35 = vpop.f32.mrb[79].mxu0 }
 0x2de   : > { %v2965_v38 = vpop.f32.mrb[80].mxu0 }
 0x2df   : > { %v1224_v28 = vpop.f32.mrb[81].mxu0 }
 0x2e0   : > { %v2966_v3 = vpop.f32.mrb[82].mxu0 }
 0x2e1   : > { %v1227_v4 = vpop.f32.mrb[83].mxu0 }
 0x2e9   : > { %v3705_v5 = vpop.f32.mrb[84].mxu0 }
 0x2ea   : > { %v3707_v6 = vpop.f32.mrb[85].mxu0 }
 0x2eb   : > { %v3709_v8 = vpop.f32.mrb[86].mxu0 }
 0x2ec   : > { %v3711_v9 = vpop.f32.mrb[87].mxu0 }
 0x305   : > { %v3029_v11 = vpop.f32.mrb[32].mxu1 }
 0x306   : > { %v1496_v12 = vpop.f32.mrb[33].mxu1 }
 0x307   : > { %v3030_v13 = vpop.f32.mrb[34].mxu1 }
 0x308   : > { %v1498_v15 = vpop.f32.mrb[35].mxu1 }
 0x30d   : > { %v3033_v16 = vpop.f32.mrb[36].mxu1 }
 0x30e   : > { %v1508_v18 = vpop.f32.mrb[37].mxu1 }
 0x30f   : > { %v3034_v19 = vpop.f32.mrb[38].mxu1 }
 0x310   : > { %v1510_v20 = vpop.f32.mrb[39].mxu1 }
 0x315   : > { %v3049_v21 = vpop.f32.mrb[20].mxu1 }
 0x316   : > { %v3091_v25 = vadd.f32 %v3049_v21, %v2961_v61  ;;  %v1666_v26 = vpop.f32.mrb[21].mxu1 }
 0x317   : > { %v3092_v29 = vadd.f32 %v1666_v26, %v1208_v14  ;;  %v3050_v30 = vpop.f32.mrb[22].mxu1 }
 0x318   : > { %v1818_v31 = vadd.f32 %v3091_v25, %v3716_v23  ;;  %v3093_v32 = vadd.f32 %v3050_v30, %v2962_v17  ;;  %v1669_v33 = vpop.f32.mrb[23].mxu1 }
 0x319   : > { %v1816_v34 = vadd.f32 %v3092_v29, %v3716_v23  ;;  %v3094_v36 = vadd.f32 %v1669_v33, %v1211_v35 }
 0x31a   : > { %v1842_v37 = vmax.f32 %v1818_v31, 0.0  ;;  %v1819_v39 = vadd.f32 %v3093_v32, %v3716_v23 }
 0x31b   : > { %v1840_v45 = vmax.f32 %v1816_v34, 0.0  ;;  %v1817_v46 = vadd.f32 %v3094_v36, %v3716_v23 }
 0x31c   : > { %v1843_v47 = vmax.f32 %v1819_v39, 0.0 }
 0x31d   : > { %v1864_v48 = vmax.f32 %v1840_v45, %v1842_v37  ;;  %v1841_v49 = vmax.f32 %v1817_v46, 0.0  ;;  %v3053_v50 = vpop.f32.mrb[24].mxu1 }
 0x31e   : > { %v3095_v53 = vadd.f32 %v3053_v50, %v2965_v38  ;;  %v1682_v54 = vpop.f32.mrb[25].mxu1 }
 0x31f   : > { %v1882_v56 = vrot.slane %v1864_v48, 1  ;;  %v1865_v59 = vmax.f32 %v1841_v49, %v1843_v47  ;;  %v3096_v22 = vadd.f32 %v1682_v54, %v1224_v28  ;;  %v3054_v60 = vpop.f32.mrb[26].mxu1 }
 0x320   : > { %v1822_v62 = vadd.f32 %v3095_v53, %v3716_v23  ;;  %v3097_v63 = vadd.f32 %v3054_v60, %v2966_v3  ;;  %v1685_v0 = vpop.f32.mrb[27].mxu1 }
 0x321   : > { %v1894_v1 = vmax.f32 %v1864_v48, %v1882_v56  ;;  %v1906_v2 = vrot.slane %v1865_v59, 1  ;;  %v1820_v55 = vadd.f32 %v3096_v22, %v3716_v23  ;;  %v3098_v58 = vadd.f32 %v1685_v0, %v1227_v4 }
 0x322   : > { %v1846_v10 = vmax.f32 %v1822_v62, 0.0  ;;  %v1823_v24 = vadd.f32 %v3097_v63, %v3716_v23 }
 0x323   : > { %v1930_v27 = vrot.slane %v1894_v1, 3  ;;  %v2118_v40 = vrot.slane %v1894_v1, 2  ;;  %v2130_v43 = vrot.slane %v1894_v1, 5  ;;  %v1918_v57 = vmax.f32 %v1865_v59, %v1906_v2 }
 0x324   : > { %v1844_v61 = vmax.f32 %v1820_v55, 0.0  ;;  %v1847_v14 = vmax.f32 %v1823_v24, 0.0  ;;  %v1821_v17 = vadd.f32 %v3098_v58, %v3716_v23 }
 0x325   : > { %v1961_v35 = vsel %vm1960_vm7, %v1894_v1, %v1930_v27  ;;  %v1948_v38 = vrot.slane %v1918_v57, 6  ;;  %v2142_v28 = vsel %vm1960_vm7, %v2118_v40, %v2130_v43  ;;  %v3057_v3 = vpop.f32.mrb[28].mxu1 }
 0x326   : > { %v2148_v4 = vsel %vm1967_vm8, %v2142_v28, %v1918_v57  ;;  %v1866_v11 = vmax.f32 %v1844_v61, %v1846_v10  ;;  %v1845_v12 = vmax.f32 %v1821_v17, 0.0  ;;  %v3099_v13 = vadd.f32 %v3057_v3, %v3705_v5  ;;  %v1698_v15 = vpop.f32.mrb[29].mxu1 }
 0x327   : > { %v1968_v16 = vsel %vm1967_vm8, %v1961_v35, %v1948_v38  ;;  %v3734_v18 = vrot.slane %v2148_v4, %v3724_v7  ;;  %v3100_v19 = vadd.f32 %v1698_v15, %v3707_v6  ;;  %v3058_v20 = vpop.f32.mrb[30].mxu1 }
 0x328   : > { %v1986_v21 = vrot.slane %v1968_v16, %v3724_v7  ;;  %v1883_v25 = vrot.slane %v1866_v11, 1  ;;  %v1867_v26 = vmax.f32 %v1845_v12, %v1847_v14  ;;  %v1826_v29 = vadd.f32 %v3099_v13, %v3716_v23  ;;  %v1701_v30 = vpop.f32.mrb[31].mxu1 }
 0x329   : > { %v2167_v31 = vcombine.high %v3734_v18, %v3734_v18  ;;  %v1824_v5 = vadd.f32 %v3100_v19, %v3716_v23  ;;  %v3101_v32 = vadd.f32 %v3058_v20, %v3709_v8  ;;  %v3102_v33 = vadd.f32 %v1701_v30, %v3711_v9 }
 0x32a   : > { %v1987_v34 = vcombine.high %v1986_v21, %v1986_v21  ;;  %v3745_v6 = vrot.slane %v1986_v21, %v3724_v7  ;;  %v1895_v36 = vmax.f32 %v1866_v11, %v1883_v25  ;;  %v1907_v37 = vrot.slane %v1867_v26, 1 }
 0x32b   : > { %v1850_v39 = vmax.f32 %v1826_v29, 0.0  ;;  %v1848_v41 = vmax.f32 %v1824_v5, 0.0  ;;  %v1827_v42 = vadd.f32 %v3101_v32, %v3716_v23  ;;  %v1825_v44 = vadd.f32 %v3102_v33, %v3716_v23 }
 0x32c   : > { %v3750_v45 = vrot.slane %v1987_v34, %v3724_v7  ;;  %v2002_v8 = vcombine.high %v3745_v6, %v3745_v6  ;;  %v1931_v46 = vrot.slane %v1895_v36, 3  ;;  %v2119_v9 = vrot.slane %v1895_v36, 2 }
 0x32d   : > { %v2131_v47 = vrot.slane %v1895_v36, 5  ;;  %v1919_v48 = vmax.f32 %v1867_v26, %v1907_v37  ;;  %v1868_v49 = vmax.f32 %v1848_v41, %v1850_v39  ;;  %v1851_v50 = vmax.f32 %v1827_v42, 0.0  ;;  %v3061_v51 = vpop.f32.mrb[0].mxu1 }
 0x32e   : > { %v2298_v52 = vcombine.low %v3745_v6, %v3750_v45  ;;  %v1962_v53 = vsel %vm1960_vm7, %v1895_v36, %v1931_v46  ;;  %v1849_v54 = vmax.f32 %v1825_v44, 0.0  ;;  %v1830_v56 = vadd.f32 %v3061_v51, %v3716_v23  ;;  %v1714_v59 = vpop.f32.mrb[1].mxu1 }
 0x32f   : > { %v1949_v22 = vrot.slane %v1919_v48, 6  ;;  %v2143_v60 = vsel %vm1960_vm7, %v2119_v9, %v2131_v47  ;;  %v1884_v62 = vrot.slane %v1868_v49, 1  ;;  %v1828_v63 = vadd.f32 %v3716_v23, %v1714_v59  ;;  %v3062_v0 = vpop.f32.mrb[2].mxu1 }
 0x330   : > { %v2149_v1 = vsel %vm1967_vm8, %v2143_v60, %v1919_v48  ;;  %v1869_v2 = vmax.f32 %v1849_v54, %v1851_v50  ;;  %v1854_v55 = vmax.f32 %v1830_v56, 0.0  ;;  %v1831_v58 = vadd.f32 %v3062_v0, %v3716_v23  ;;  %v1717_v10 = vpop.f32.mrb[3].mxu1 }
 0x331   : > { %v1969_v24 = vsel %vm1967_vm8, %v1962_v53, %v1949_v22  ;;  %v3764_v27 = vrot.slane %v2149_v1, %v3724_v7  ;;  %v1896_v40 = vmax.f32 %v1868_v49, %v1884_v62  ;;  %v1852_v43 = vmax.f32 %v1828_v63, 0.0 }
 0x332   : > { %v2009_v57 = vrot.slane %v1969_v24, %v3724_v7  ;;  %v1908_v61 = vrot.slane %v1869_v2, 1  ;;  %v1855_v14 = vmax.f32 %v1831_v58, 0.0  ;;  %v1829_v17 = vadd.f32 %v3716_v23, %v1717_v10 }
 0x333   : > { %v2190_v35 = vcombine.high %v3764_v27, %v3764_v27  ;;  %v1932_v38 = vrot.slane %v1896_v40, 3  ;;  %v2120_v28 = vrot.slane %v1896_v40, 2  ;;  %v2132_v3 = vrot.slane %v1896_v40, 5 }
 0x334   : > { %v2010_v4 = vcombine.high %v2009_v57, %v2009_v57  ;;  %v3771_v11 = vrot.slane %v2009_v57, %v3724_v7  ;;  %v1920_v12 = vmax.f32 %v1869_v2, %v1908_v61  ;;  %v1870_v13 = vmax.f32 %v1852_v43, %v1854_v55 }
 0x335   : > { %v1963_v15 = vsel %vm1960_vm7, %v1896_v40, %v1932_v38  ;;  %v2144_v16 = vsel %vm1960_vm7, %v2120_v28, %v2132_v3  ;;  %v1853_v19 = vmax.f32 %v1829_v17, 0.0  ;;  %v3065_v20 = vpop.f32.mrb[4].mxu1  ;;  %v3777_v21 = vrot.slane %v3734_v18, %v3724_v7 }
 0x336   : > { %v3780_v25 = vrot.slane %v2010_v4, %v3724_v7  ;;  %v2025_v26 = vcombine.high %v3771_v11, %v3771_v11  ;;  %v3785_v29 = vcombine.low %v2002_v8, %v3771_v11  ;;  %v1950_v30 = vrot.slane %v1920_v12, 6  ;;  %v1730_v5 = vpop.f32.mrb[5].mxu1 }
 0x337   : > { %v2150_v32 = vsel %vm1967_vm8, %v2144_v16, %v1920_v12  ;;  %v1885_v33 = vrot.slane %v1870_v13, 1  ;;  %v1871_v34 = vmax.f32 %v1853_v19, %v1855_v14  ;;  %v1834_v36 = vadd.f32 %v3065_v20, %v3716_v23  ;;  %v3066_v37 = vpop.f32.mrb[6].mxu1 }
 0x338   : > { %v1970_v39 = vsel %vm1967_vm8, %v1963_v15, %v1950_v30  ;;  %v3791_v41 = vrot.slane %v2150_v32, %v3724_v7  ;;  %v1832_v42 = vadd.f32 %v3716_v23, %v1730_v5  ;;  %v1835_v44 = vadd.f32 %v3066_v37, %v3716_v23  ;;  %v1733_v8 = vpop.f32.mrb[7].mxu1 }
 0x339   : > { %v2032_v46 = vrot.slane %v1970_v39, %v3724_v7  ;;  %v1897_v9 = vmax.f32 %v1870_v13, %v1885_v33  ;;  %v1909_v47 = vrot.slane %v1871_v34, 1  ;;  %v1858_v48 = vmax.f32 %v1834_v36, 0.0 }
 0x33a   : > { %v2213_v49 = vcombine.high %v3791_v41, %v3791_v41  ;;  %v1856_v50 = vmax.f32 %v1832_v42, 0.0  ;;  %v1859_v51 = vmax.f32 %v1835_v44, 0.0  ;;  %v1833_v53 = vadd.f32 %v3716_v23, %v1733_v8 }
 0x33b   : > { %v2033_v54 = vcombine.high %v2032_v46, %v2032_v46  ;;  %v3800_v56 = vrot.slane %v2032_v46, %v3724_v7  ;;  %v1933_v59 = vrot.slane %v1897_v9, 3  ;;  %v2121_v22 = vrot.slane %v1897_v9, 2 }
 0x33c   : > { %v2133_v60 = vrot.slane %v1897_v9, 5  ;;  %v1921_v62 = vmax.f32 %v1871_v34, %v1909_v47  ;;  %v1872_v63 = vmax.f32 %v1856_v50, %v1858_v48  ;;  %v1857_v0 = vmax.f32 %v1833_v53, 0.0 }
 0x33d   : > { %v3803_v1 = vrot.slane %v2033_v54, %v3724_v7  ;;  %v1964_v2 = vsel %vm1960_vm7, %v1897_v9, %v1933_v59  ;;  %v2048_v55 = vcombine.high %v3800_v56, %v3800_v56  ;;  %v3069_v58 = vpop.f32.mrb[8].mxu1  ;;  %v3812_v10 = vrot.slane %v2167_v31, %v3724_v7 }
 0x33e   : > { %v1951_v24 = vrot.slane %v1921_v62, 6  ;;  %v2145_v40 = vsel %vm1960_vm7, %v2121_v22, %v2133_v60  ;;  %v1886_v43 = vrot.slane %v1872_v63, 1  ;;  %v1873_v57 = vmax.f32 %v1857_v0, %v1859_v51  ;;  %v1746_v61 = vpop.f32.mrb[9].mxu1 }
 0x33f   : > { %v2301_v14 = vcombine.low %v3800_v56, %v3803_v1  ;;  %v2151_v17 = vsel %vm1967_vm8, %v2145_v40, %v1921_v62  ;;  %v1838_v38 = vadd.f32 %v3069_v58, %v3716_v23  ;;  %v1836_v28 = vadd.f32 %v3716_v23, %v1746_v61  ;;  %v3070_v3 = vpop.f32.mrb[10].mxu1 }
 0x340   : > { %v1971_v18 = vsel %vm1967_vm8, %v1964_v2, %v1951_v24  ;;  %v3822_v31 = vrot.slane %v2151_v17, %v3724_v7  ;;  %v1898_v4 = vmax.f32 %v1872_v63, %v1886_v43  ;;  %v1910_v12 = vrot.slane %v1873_v57, 1  ;;  %v1749_v13 = vpop.f32.mrb[11].mxu1 }
 0x341   : > { %v2055_v15 = vrot.slane %v1971_v18, %v3724_v7  ;;  %v1862_v16 = vmax.f32 %v1838_v38, 0.0  ;;  %v1860_v19 = vmax.f32 %v1836_v28, 0.0  ;;  %v1839_v20 = vadd.f32 %v3070_v3, %v3716_v23 }
 0x342   : > { %v2236_v30 = vcombine.high %v3822_v31, %v3822_v31  ;;  %v3830_v5 = vrot.slane %v3822_v31, %v3724_v7  ;;  %v1934_v32 = vrot.slane %v1898_v4, 3  ;;  %v2122_v33 = vrot.slane %v1898_v4, 2 }
 0x343   : > { %v2056_v34 = vcombine.high %v2055_v15, %v2055_v15  ;;  %v2063_v36 = vrot.slane %v2055_v15, %v3724_v7  ;;  %v2134_v37 = vrot.slane %v1898_v4, 5  ;;  %v1922_v39 = vmax.f32 %v1873_v57, %v1910_v12 }
 0x344   : > { %v1965_v42 = vsel %vm1960_vm7, %v1898_v4, %v1934_v32  ;;  %v1874_v44 = vmax.f32 %v1860_v19, %v1862_v16  ;;  %v1863_v8 = vmax.f32 %v1839_v20, 0.0  ;;  %v1837_v46 = vadd.f32 %v3716_v23, %v1749_v13 }
 0x345   : > { %v2070_v9 = vrot.slane %v2056_v34, %v3724_v7  ;;  %v2071_v47 = vcombine.high %v2063_v36, %v2063_v36  ;;  %v3836_v48 = vcombine.low %v2048_v55, %v2063_v36  ;;  %v1952_v50 = vrot.slane %v1922_v39, 6  ;;  %v3073_v51 = vpop.f32.mrb[40].mxu1 }
 0x346   : > { %v2146_v53 = vsel %vm1960_vm7, %v2122_v33, %v2134_v37  ;;  %v1887_v54 = vrot.slane %v1874_v44, 1  ;;  %v1861_v59 = vmax.f32 %v1837_v46, 0.0  ;;  %v1762_v22 = vpop.f32.mrb[41].mxu1  ;;  %v2182_v60 = vcombine.high %v3777_v21, %v3777_v21 }
 0x347   : > { %v3841_v62 = vcombine.low %v2070_v9, %v2071_v47  ;;  %v1972_v63 = vsel %vm1967_vm8, %v1965_v42, %v1952_v50  ;;  %v2152_v23 = vsel %vm1967_vm8, %v2146_v53, %v1922_v39  ;;  %v3074_v0 = vpop.f32.mrb[42].mxu1  ;;  %v2197_v2 = vrot.slane %v3764_v27, %v3724_v7 }
 0x348   : > { %v2078_v55 = vrot.slane %v1972_v63, %v3724_v7  ;;  %v2258_v58 = vrot.slane %v2152_v23, %v3724_v7  ;;  %v1899_v24 = vmax.f32 %v1874_v44, %v1887_v54  ;;  %v1875_v40 = vmax.f32 %v1861_v59, %v1863_v8  ;;  %v1764_v43 = vpop.f32.mrb[43].mxu1 }
 0x349   : > { %v2204_v57 = vrot.slane %v2190_v35, %v3724_v7  ;;  %v2205_v61 = vcombine.high %v2197_v2, %v2197_v2  ;;  %v2220_v17 = vrot.slane %v3791_v41, %v3724_v7  ;;  %v2227_v38 = vrot.slane %v2213_v49, %v3724_v7 }
 0x34a   : > { %v2079_v28 = vcombine.high %v2078_v55, %v2078_v55  ;;  %v3860_v3 = vrot.slane %v2078_v55, %v3724_v7  ;;  %v2259_v18 = vcombine.high %v2258_v58, %v2258_v58  ;;  %v2266_v4 = vrot.slane %v2258_v58, %v3724_v7 }
 0x34b   : > { %v1935_v12 = vrot.slane %v1899_v24, 3  ;;  %v2123_v13 = vrot.slane %v1899_v24, 2  ;;  %v2135_v27 = vrot.slane %v1899_v24, 5  ;;  %v1911_v35 = vrot.slane %v1875_v40, 1 }
 0x34c   : > { %v3864_v15 = vrot.slane %v2079_v28, %v3724_v7  ;;  %v2094_v16 = vcombine.high %v3860_v3, %v3860_v3  ;;  %v2432_v41 = vcombine.low %v3777_v21, %v3812_v10  ;;  %v2433_v49 = vcombine.low %v2182_v60, %v2197_v2 }
 0x34d   : > { %v1966_v19 = vsel %vm1960_vm7, %v1899_v24, %v1935_v12  ;;  %v1923_v20 = vmax.f32 %v1875_v40, %v1911_v35  ;;  %v2147_v32 = vsel %vm1960_vm7, %v2123_v13, %v2135_v27  ;;  %v2434_v33 = vcombine.low %v2204_v57, %v2205_v61  ;;  %v3077_v34 = vpop.f32.mrb[44].mxu1 }
 0x34e   : > { %v2349_v36 = vcombine.low %v3860_v3, %v3864_v15  ;;  %v2435_v37 = vcombine.low %v2220_v17, %v2227_v38  ;;  %v2442_v39 = vrot.slane %v2432_v41, %v3724_v7  ;;  %v2449_v42 = vrot.slane %v2433_v49, %v3724_v7  ;;  %v1774_v44 = vpop.f32.mrb[45].mxu1 }
 0x34f   : > { %v1953_v8 = vrot.slane %v1923_v20, 6  ;;  %v2153_v21 = vsel %vm1967_vm8, %v2147_v32, %v1923_v20  ;;  %v2456_v10 = vrot.slane %v2434_v33, %v3724_v7  ;;  %v3078_v46 = vpop.f32.mrb[46].mxu1  ;;  %v2228_v9 = vcombine.high %v2220_v17, %v2220_v17 }
 0x350   : > { %v2281_v47 = vrot.slane %v2153_v21, %v3724_v7  ;;  %v2463_v50 = vrot.slane %v2435_v37, %v3724_v7  ;;  %v2464_v51 = vcombine.low %v2442_v39, %v2449_v42  ;;  %v1776_v53 = vpop.f32.mrb[47].mxu1  ;;  %v2250_v54 = vrot.slane %v2236_v30, %v3724_v7 }
 0x351   : > { %v1973_v59 = vsel %vm1967_vm8, %v1966_v19, %v1953_v8  ;;  %v2251_v22 = vcombine.high %v3830_v5, %v3830_v5  ;;  %v2273_v60 = vrot.slane %v2259_v18, %v3724_v7  ;;  %v2274_v63 = vcombine.high %v2266_v4, %v2266_v4 }
 0x352   : > { %v2101_v23 = vrot.slane %v1973_v59, %v3724_v7  ;;  %v2465_v0 = vcombine.low %v2456_v10, %v2463_v50  ;;  %v2472_v2 = vrot.slane %v2464_v51, %v3724_v7  ;;  %v2282_v55 = vcombine.high %v2281_v47, %v2281_v47 }
 0x353   : > { %v2289_v58 = vrot.slane %v2281_v47, %v3724_v7  ;;  %v2481_v24 = vcombine.low %v2228_v9, %v3830_v5  ;;  %v2482_v31 = vcombine.low %v2250_v54, %v2251_v22  ;;  %v2483_v30 = vcombine.low %v2266_v4, %v2273_v60 }
 0x354   : > { %v2102_v40 = vcombine.high %v2101_v23, %v2101_v23  ;;  %v2109_v43 = vrot.slane %v2101_v23, %v3724_v7  ;;  %v2479_v57 = vrot.slane %v2465_v0, %v3724_v7  ;;  %v2296_v61 = vrot.slane %v2282_v55, %v3724_v7 }
 0x355   : > { %v2297_v17 = vcombine.high %v2289_v58, %v2289_v58  ;;  %v2484_v38 = vcombine.low %v2274_v63, %v2289_v58  ;;  %v2491_v28 = vrot.slane %v2481_v24, %v3724_v7  ;;  %v2498_v3 = vrot.slane %v2482_v31, %v3724_v7 }
 0x356   : > { %v2116_v18 = vrot.slane %v2102_v40, %v3724_v7  ;;  %v2117_v12 = vcombine.high %v2109_v43, %v2109_v43  ;;  %v2350_v13 = vcombine.low %v2094_v16, %v2109_v43  ;;  %v2480_v5 = vcombine.low %v2472_v2, %v2479_v57 }
 0x357   : > { %v2530_v27 = vcombine.low %v2296_v61, %v2297_v17  ;;  %v2505_v4 = vrot.slane %v2483_v30, %v3724_v7  ;;  %v2512_v35 = vrot.slane %v2484_v38, %v3724_v7  ;;  %v2513_v15 = vcombine.low %v2491_v28, %v2498_v3 }
 0x358   : > { %v2777_v41 = vpack.c.bf16 %v2480_v5, %v2480_v5  ;;  %v2300_v49 = vcombine.low %v3780_v25, %v2025_v26  ;;  %v2308_v19 = vrot.slane %v2298_v52, %v3724_v7  ;;  %v2315_v16 = vrot.slane %v3785_v29, %v3724_v7 }
 0x359   : > { %v2537_v20 = vrot.slane %v2530_v27, %v3724_v7  ;;  %v2514_v32 = vcombine.low %v2505_v4, %v2512_v35  ;;  %v2329_v33 = vrot.slane %v2301_v14, %v3724_v7  ;;  %v2396_v26 = vcombine.low %v2116_v18, %v2117_v12 }
 0x35a   : > { %2558 = vrot.lane.b32.xlu0 %v2777_v41, %s3203_s17  ;;  %v2322_v11 = vrot.slane %v2300_v49, %v3724_v7  ;;  %v2330_v25 = vcombine.low %v2308_v19, %v2315_v16  ;;  %v2521_v45 = vrot.slane %v2513_v15, %v3724_v7  ;;  %v2364_v29 = vrot.slane %v3841_v62, %v3724_v7 }
 0x35b   : > { %v2544_v6 = vrot.slane %v2537_v20, %v3724_v7  ;;  %v2528_v52 = vrot.slane %v2514_v32, %v3724_v7  ;;  %v2403_v56 = vrot.slane %v2396_v26, %v3724_v7  ;;  %v2371_v1 = vrot.slane %v2349_v36, %v3724_v7 }
 0x35c   : > { %v2331_v34 = vcombine.low %v2322_v11, %v2329_v33  ;;  %v2378_v14 = vrot.slane %v2350_v13, %v3724_v7  ;;  %v2357_v42 = vrot.slane %v3836_v48, %v3724_v7  ;;  %v2338_v44 = vrot.slane %v2330_v25, %v3724_v7 }
 0x35d   : > { %v2779_v37 = vpack.c.bf16 %v2544_v6, %v2544_v6  ;;  %v2529_v39 = vcombine.low %v2521_v45, %v2528_v52  ;;  %v2410_v21 = vrot.slane %v2403_v56, %v3724_v7 }
 0x35e   : > { %v2345_v8 = vrot.slane %v2331_v34, %v3724_v7  ;;  %v2380_v62 = vcombine.low %v2371_v1, %v2378_v14  ;;  %v2379_v36 = vcombine.low %v2357_v42, %v2364_v29 }
 0x35f   : > { %2562 = vrot.lane.b32.xlu0 %v2779_v37, %s3203_s17  ;;  %v2778_v10 = vpack.c.bf16 %v2529_v39, %v2529_v39  ;;  %v2776_v9 = vpack.c.bf16 %v2410_v21, %v2410_v21 }
 0x360   : > { %v2346_v46 = vcombine.low %v2338_v44, %v2345_v8  ;;  %v2394_v47 = vrot.slane %v2380_v62, %v3724_v7  ;;  %v2387_v48 = vrot.slane %v2379_v36, %v3724_v7 }
 0x361   : > { %2560 = vrot.lane.b32.xlu1 %v2778_v10, %s3203_s17  ;;  %2431 = vst.msk [vmem:[%s224_s27 + $0x8] sm:$0x1] %vm2430_vm9, %v2776_v9 }
 0x362   : > { %v2774_v50 = vpack.c.bf16 %v2346_v46, %v2346_v46  ;;  %v2395_v51 = vcombine.low %v2387_v48, %v2394_v47 }
 0x364   : > { %2428 = vst.msk [vmem:[%s224_s27] sm:$0xf] %vm2427_vm10, %v2774_v50  ;;  %v2775_v53 = vpack.c.bf16 %v2395_v51, %v2395_v51 }
 0x366   : > { %2429 = vst.msk [vmem:[%s224_s27 + $0x4] sm:$0xf] %vm2427_vm10, %v2775_v53 }
 0x3cc   : > { %v2559_v54 = vpop.permute.xlu0 %2558 }
 0x3cd   : > { %2568 = vst.msk [vmem:[%s224_s27] sm:$0xf] %vm2567_vm11, %v2559_v54 }
 0x3d1   : > { %v2563_v59 = vpop.permute.xlu0 %2562 }
 0x3d2   : > { %2571 = vst.msk [vmem:[%s224_s27 + $0x8] sm:$0x1] %vm2570_vm12, %v2563_v59 }
 0x3d3   : > { %v2561_v22 = vpop.permute.xlu1 %2560 }
 0x3d4   : > { %2569 = vst.msk [vmem:[%s224_s27 + $0x4] sm:$0xf] %vm2567_vm11, %v2561_v22 }
 0x3d5 PF: > { %s15_s18 = sadd.s32 1, %s3199_s18  }
 0x3d6   : > { %p12_p4 = scmp.ge.s32.totalorder %s15_s18, 4  }
 0x3d8   :  { %14 = sbr.rel (!%p12_p4) target bundleno = 1 (0x1), region = 72 }

</bundles_post_ra>
